<compile_context>
chip_gen: v6e
topology: v6e:2x2x1
jax: 0.10.0
libtpu: 0.0.40
codegen_flags: <defaults>
</compile_context>

<pallas_src>
import functools

import jax
import jax.numpy as jnp
from jax import lax
from jax.experimental import pallas as pl
from jax.experimental.pallas import tpu as pltpu


_PARALLEL = pltpu.CompilerParams(dimension_semantics=("parallel",))

# TODO(synk): for production resolutions / channel counts, tile the per-batch blocks over
# H*W (with an hw accumulator where needed) and set vmem_limit_bytes explicitly — a
# whole-image block that fits v5e/v6e's 128 MiB VMEM can OOM v7x's 64 MiB.


def _cost(flops, transcendentals, arrays, out_bytes):
    b = sum(int(a.size) * a.dtype.itemsize for a in arrays) + int(out_bytes)
    return pl.CostEstimate(flops=int(flops), transcendentals=int(transcendentals),
                           bytes_accessed=int(b))


# ----------------------------------------------------------------------------
# im2col (channels-major): (N, C, H*W) -> (N, 9*C, H*W), row order t*C + c, t = kh*3+kw
# ----------------------------------------------------------------------------
def _im2col_cm(x_cm, H, W):
    N, C, _ = x_cm.shape
    x4 = x_cm.reshape(N, C, H, W)
    xp = jnp.pad(x4, ((0, 0), (0, 0), (1, 1), (1, 1)))
    taps = [xp[:, :, kh:kh + H, kw:kw + W] for kh in range(3) for kw in range(3)]
    return jnp.stack(taps, axis=1).reshape(N, 9 * C, H * W).astype(jnp.bfloat16)


# ----------------------------------------------------------------------------
# 3x3 conv (stride 1, pad 1) as a single per-batch matmul, BN shift + ReLU fused
# ----------------------------------------------------------------------------
def _conv_mm_kernel(p_ref, w_ref, s_ref, o_ref, *, relu):
    y = jnp.dot(w_ref[...], p_ref[...], preferred_element_type=jnp.float32)
    y = y + s_ref[...]
    if relu:
        y = jnp.maximum(y, 0.0)
    o_ref[...] = y.astype(o_ref.dtype)


def conv3x3_cm(x_cm, H, W, w_mat, shift, relu=True):
    """x_cm: (N, Cin, H*W); w_mat: (Cout, 9*Cin) bf16 (BN scale folded); shift: (Cout, 1)."""
    N = x_cm.shape[0]
    Cout, K9 = w_mat.shape
    HW = H * W
    patches = _im2col_cm(x_cm, H, W)                                   # (N, 9*Cin, HW) bf16
    return pl.pallas_call(
        functools.partial(_conv_mm_kernel, relu=relu),
        out_shape=jax.ShapeDtypeStruct((N, Cout, HW), jnp.bfloat16),
        grid=(N,),
        in_specs=[
            pl.BlockSpec((None, K9, HW), lambda n: (n, 0, 0)),
            pl.BlockSpec((Cout, K9), lambda n: (0, 0)),                # VMEM-resident weight
            pl.BlockSpec((Cout, 1), lambda n: (0, 0)),
        ],
        out_specs=pl.BlockSpec((None, Cout, HW), lambda n: (n, 0, 0)),
        compiler_params=_PARALLEL,
        cost_estimate=_cost(2 * N * Cout * K9 * HW, 0,
                            (patches, w_mat, shift), N * Cout * HW * 2),
    )(patches, w_mat, shift)


# ----------------------------------------------------------------------------
# ChannelGCN, fully fused (one kernel per batch, channels-major)
# ----------------------------------------------------------------------------
def _cgcn_kernel(x_ref, wpt_ref, tpt_ref, adjT_ref, tadj_ref, wwg_ref, twg_ref,
                 wc3_ref, t3_ref, o_ref, *, c2):
    x = x_ref[...]                                                     # (C, HW) bf16
    # fused phi || theta 1x1 projections (+ folded BN), channels-major
    pt = jnp.dot(wpt_ref[...], x, preferred_element_type=jnp.float32) + tpt_ref[...]
    xs = pt[:c2, :]                                                    # (c2, HW) f32
    bb = pt[c2:, :]                                                    # (c1, HW) f32
    # z_idt = x_sqz @ b^T  (contract over the hw/lane dim)
    z = lax.dot_general(xs, bb, (((1,), (1,)), ((), ())),
                        preferred_element_type=jnp.float32)            # (c2, c1)
    # conv_adj + bn_adj (right-multiply form) + z_idt residual
    z = jnp.dot(z, adjT_ref[...], preferred_element_type=jnp.float32) + tadj_ref[...] + z
    # conv_wg + bn_wg (left-multiply form)
    z = jnp.dot(wwg_ref[...], z, preferred_element_type=jnp.float32) + twg_ref[...]
    # y = z @ b
    y = jnp.dot(z, bb, preferred_element_type=jnp.float32)             # (c2, HW)
    # conv3 + bn3 + residual(x) + ReLU
    out = (jnp.dot(wc3_ref[...], y, preferred_element_type=jnp.float32)
           + t3_ref[...] + x.astype(jnp.float32))
    o_ref[...] = jnp.maximum(out, 0.0).astype(o_ref.dtype)


def channel_gcn_cm(x_cm, p):
    N, C, HW = x_cm.shape
    cc = p['cg_pt_w'].shape[0]
    c1 = cc // 3
    c2 = cc - c1
    flops = 2 * N * HW * (cc * C + c2 * c1 + c2 * c1 + c2 * C)
    return pl.pallas_call(
        functools.partial(_cgcn_kernel, c2=c2),
        out_shape=jax.ShapeDtypeStruct((N, C, HW), jnp.bfloat16),
        grid=(N,),
        in_specs=[
            pl.BlockSpec((None, C, HW), lambda n: (n, 0, 0)),
            pl.BlockSpec((cc, C), lambda n: (0, 0)),
            pl.BlockSpec((cc, 1), lambda n: (0, 0)),
            pl.BlockSpec((c1, c1), lambda n: (0, 0)),
            pl.BlockSpec((1, c1), lambda n: (0, 0)),
            pl.BlockSpec((c2, c2), lambda n: (0, 0)),
            pl.BlockSpec((c2, 1), lambda n: (0, 0)),
            pl.BlockSpec((C, c2), lambda n: (0, 0)),
            pl.BlockSpec((C, 1), lambda n: (0, 0)),
        ],
        out_specs=pl.BlockSpec((None, C, HW), lambda n: (n, 0, 0)),
        compiler_params=_PARALLEL,
        cost_estimate=_cost(flops, 0, (x_cm, p['cg_pt_w']), N * C * HW * 2),
    )(x_cm, p['cg_pt_w'], p['cg_pt_t'], p['cg_adj_wT'], p['cg_adj_t'],
      p['cg_wg_w'], p['cg_wg_t'], p['cg_c3_w'], p['cg_c3_t'])


# ----------------------------------------------------------------------------
# SpatialGCN + bilinear upsample (align_corners) + a*b + a fuse
# (one kernel per batch, channels-major)
# ----------------------------------------------------------------------------
def _sgcn_fuse_kernel(loc_ref, cgb_ref, wkqv_ref, bkqv_ref, wswg_ref, tswg_ref,
                      wso_ref, bso_ref, upT_ref, o_ref, *, ci):
    loc = loc_ref[...]                                                 # (C, hw3) f32
    # fused k || q || v 1x1 projections (bias=True, no BN)
    kqv = jnp.dot(wkqv_ref[...], loc, preferred_element_type=jnp.float32) + bkqv_ref[...]
    k = kqv[:ci, :]
    q = kqv[ci:2 * ci, :]
    v = kqv[2 * ci:, :]
    # AV = node_q @ node_v   ==  q_cm @ v_cm^T
    av = lax.dot_general(q, v, (((1,), (1,)), ((), ())),
                         preferred_element_type=jnp.float32)           # (ci, ci)
    # softmax over last dim (exp -> EUP, approx reciprocal -> EUP, no VALU divide)
    av = jnp.exp(av - jnp.max(av, axis=-1, keepdims=True))
    av = av * pl.reciprocal(jnp.sum(av, axis=-1, keepdims=True), approx=True)
    # (node_k @ AV)^T  ==  AV^T @ k_cm, then conv_wg + bn_wg
    av3 = lax.dot_general(av, k, (((0,), (0,)), ((), ())),
                          preferred_element_type=jnp.float32)          # (ci, hw3)
    avw = jnp.dot(wswg_ref[...], av3, preferred_element_type=jnp.float32) + tswg_ref[...]
    # out projection + BN + residual + ReLU
    g = jnp.dot(wso_ref[...], avw, preferred_element_type=jnp.float32) + bso_ref[...] + loc
    g = jnp.maximum(g, 0.0)                                            # (C, hw3)
    # bilinear (align_corners) upsample via precomputed kron matrix, then CG*up + CG
    up = jnp.dot(g, upT_ref[...], preferred_element_type=jnp.float32)  # (C, HW)
    cgb = cgb_ref[...].astype(jnp.float32)
    o_ref[...] = (cgb * up + cgb).astype(o_ref.dtype)


def spatial_local_fused(loc_cm, cgb_cm, p, uhwT):
    N, C, hw3 = loc_cm.shape
    HW = cgb_cm.shape[-1]
    ci = p['sp_wg_w'].shape[0]
    flops = 2 * N * (3 * ci * C * hw3 + 2 * ci * ci * hw3 + ci * C * hw3 + C * hw3 * HW)
    return pl.pallas_call(
        functools.partial(_sgcn_fuse_kernel, ci=ci),
        out_shape=jax.ShapeDtypeStruct((N, C, HW), jnp.bfloat16),
        grid=(N,),
        in_specs=[
            pl.BlockSpec((None, C, hw3), lambda n: (n, 0, 0)),
            pl.BlockSpec((None, C, HW), lambda n: (n, 0, 0)),
            pl.BlockSpec((3 * ci, C), lambda n: (0, 0)),
            pl.BlockSpec((3 * ci, 1), lambda n: (0, 0)),
            pl.BlockSpec((ci, ci), lambda n: (0, 0)),
            pl.BlockSpec((ci, 1), lambda n: (0, 0)),
            pl.BlockSpec((C, ci), lambda n: (0, 0)),
            pl.BlockSpec((C, 1), lambda n: (0, 0)),
            pl.BlockSpec((hw3, HW), lambda n: (0, 0)),
        ],
        out_specs=pl.BlockSpec((None, C, HW), lambda n: (n, 0, 0)),
        compiler_params=_PARALLEL,
        cost_estimate=_cost(flops, N * ci * ci, (loc_cm, cgb_cm, uhwT), N * C * HW * 2),
    )(loc_cm, cgb_cm, p['sp_kqv_w'], p['sp_kqv_b'], p['sp_wg_w'], p['sp_wg_t'],
      p['sp_out_w'], p['sp_out_b'], uhwT)


# ----------------------------------------------------------------------------
# Bottleneck: 3x3 conv + BN + ReLU + 1x1 conv (+bias), one kernel per batch
# ----------------------------------------------------------------------------
def _bneck_kernel(p_ref, w1_ref, t1_ref, w2_ref, b2_ref, o_ref):
    y = jnp.dot(w1_ref[...], p_ref[...], preferred_element_type=jnp.float32) + t1_ref[...]
    y = jnp.maximum(y, 0.0)                                            # (C, HW) f32
    o_ref[...] = (jnp.dot(w2_ref[...], y, preferred_element_type=jnp.float32)
                  + b2_ref[...]).astype(o_ref.dtype)


def bottleneck_cm(feat_cm, H, W, w1_mat, t1, w2, b2):
    N = feat_cm.shape[0]
    C1, K9 = w1_mat.shape
    Co = w2.shape[0]
    HW = H * W
    patches = _im2col_cm(feat_cm, H, W)                                # (N, 9*C, HW) bf16
    flops = 2 * N * HW * (C1 * K9 + Co * C1)
    return pl.pallas_call(
        _bneck_kernel,
        out_shape=jax.ShapeDtypeStruct((N, Co, HW), jnp.float32),
        grid=(N,),
        in_specs=[
            pl.BlockSpec((None, K9, HW), lambda n: (n, 0, 0)),
            pl.BlockSpec((C1, K9), lambda n: (0, 0)),
            pl.BlockSpec((C1, 1), lambda n: (0, 0)),
            pl.BlockSpec((Co, C1), lambda n: (0, 0)),
            pl.BlockSpec((Co, 1), lambda n: (0, 0)),
        ],
        out_specs=pl.BlockSpec((None, Co, HW), lambda n: (n, 0, 0)),
        compiler_params=_PARALLEL,
        cost_estimate=_cost(flops, 0, (patches, w1_mat, w2), N * Co * HW * 4),
    )(patches, w1_mat, t1, w2, b2)


# ----------------------------------------------------------------------------
# Non-Pallas glue
# ----------------------------------------------------------------------------
def _interp_matrix(n_out, n_in):
    if n_in == 1 or n_out == 1:
        src = jnp.zeros((n_out,), jnp.float32)
    else:
        src = jnp.arange(n_out, dtype=jnp.float32) * ((n_in - 1) / (n_out - 1))
    i0 = jnp.clip(jnp.floor(src).astype(jnp.int32), 0, n_in - 1)
    i1 = jnp.minimum(i0 + 1, n_in - 1)
    f = src - i0.astype(jnp.float32)
    return (jax.nn.one_hot(i0, n_in, dtype=jnp.float32) * (1.0 - f)[:, None]
            + jax.nn.one_hot(i1, n_in, dtype=jnp.float32) * f[:, None])


def depthwise3x3_s2(x_nchw, w_oihw, shift):
    # TODO(synk): tiny strided grouped conv kept in lax.conv_general_dilated (channels-major
    # NCHW, BN scale folded into the weight); not ported to a Pallas kernel.
    C = x_nchw.shape[1]
    y = lax.conv_general_dilated(
        x_nchw, w_oihw, window_strides=(2, 2), padding=((1, 1), (1, 1)),
        dimension_numbers=('NCHW', 'OIHW', 'NCHW'), feature_group_count=C)
    return y + shift[None, :, None, None]


# ----------------------------------------------------------------------------
# Full module forward (channels-major / NCHW throughout -> no transposes)
# ----------------------------------------------------------------------------
def dualgcn_forward(x_nchw, p):
    N, Cin, H, W = x_nchw.shape
    HW = H * W
    x_cm = x_nchw.reshape(N, Cin, HW).astype(jnp.bfloat16)

    cg = conv3x3_cm(x_cm, H, W, p['conva_w'], p['conva_t'], relu=True)     # conva
    cg = channel_gcn_cm(cg, p)                                             # ChannelGCN
    cgb = conv3x3_cm(cg, H, W, p['convb_w'], p['convb_t'], relu=True)      # convb

    # local branch: 3 x depthwise 3x3 stride-2 + BN (tiny)
    loc = cgb.reshape(N, -1, H, W).astype(jnp.float32)
    for i in range(3):
        loc = depthwise3x3_s2(loc, p['local_w'][i], p['local_t'][i])
    h3, w3 = loc.shape[2], loc.shape[3]
    loc = loc.reshape(N, -1, h3 * w3)

    # align_corners bilinear upsample matrix (constant-folded at trace time)
    uhwT = jnp.kron(_interp_matrix(H, h3), _interp_matrix(W, w3)).T        # (h3*w3, HW)

    # SpatialGCN + upsample + CG*local + CG, fused
    feat = spatial_local_fused(loc, cgb, p, uhwT)                          # (N, C, HW)

    out = bottleneck_cm(feat, H, W, p['bn1_w'], p['bn1_t'], p['bn2_w'], p['bn2_b'])
    return out.reshape(N, -1, H, W)                                        # NCHW


# ----------------------------------------------------------------------------
# Deterministic parameter init.  BN (inference) folded into the weights; only a
# per-channel shift remains (applied in the kernel epilogues).
# ----------------------------------------------------------------------------
def init_params(key, inplanes, interplanes, outplanes):
    keys = iter(jax.random.split(key, 160))

    def nrm(shape, s=0.1):
        return s * jax.random.normal(next(keys), shape, dtype=jnp.float32)

    def bn(c):
        gamma = 1.0 + nrm((c,))
        beta = nrm((c,))
        mean = nrm((c,))
        var = 0.5 + jax.random.uniform(next(keys), (c,), dtype=jnp.float32)
        scale = gamma * jax.lax.rsqrt(var + 1e-5)
        return scale, beta - mean * scale

    def conv3x3_folded(cin, cout):
        w = nrm((cout, cin, 3, 3))                                         # torch OIHW
        s, t = bn(cout)
        w_mat = jnp.transpose(w, (0, 2, 3, 1)).reshape(cout, 9 * cin) * s[:, None]
        return w_mat.astype(jnp.bfloat16), t.reshape(cout, 1)

    C = interplanes
    c1 = C // 4          # ChannelGCN theta out
    c2 = c1 * 2          # ChannelGCN phi out
    ci = C // 2          # SpatialGCN inter

    p = {}
    # conva
    p['conva_w'], p['conva_t'] = conv3x3_folded(inplanes, C)

    # ChannelGCN ------------------------------------------------------------
    phi_w = nrm((c2, C)); s_phi, t_phi = bn(c2)
    th_w = nrm((c1, C));  s_th, t_th = bn(c1)
    p['cg_pt_w'] = jnp.concatenate([phi_w * s_phi[:, None], th_w * s_th[:, None]],
                                   axis=0).astype(jnp.bfloat16)
    p['cg_pt_t'] = jnp.concatenate([t_phi, t_th]).reshape(c2 + c1, 1)
    adj_w = nrm((c1, c1)); s_adj, t_adj = bn(c1)
    p['cg_adj_wT'] = (adj_w * s_adj[:, None]).T                            # right-multiply
    p['cg_adj_t'] = t_adj.reshape(1, c1)
    wg_w = nrm((c2, c2)); s_wg, t_wg = bn(c2)
    p['cg_wg_w'] = wg_w * s_wg[:, None]                                    # left-multiply
    p['cg_wg_t'] = t_wg.reshape(c2, 1)
    c3_w = nrm((C, c2)); s3, t3 = bn(C)
    p['cg_c3_w'] = c3_w * s3[:, None]
    p['cg_c3_t'] = t3.reshape(C, 1)

    # convb
    p['convb_w'], p['convb_t'] = conv3x3_folded(C, C)

    # local branch (depthwise 3x3 stride 2, BN scale folded into weight)
    p['local_w'] = []
    p['local_t'] = []
    for _ in range(3):
        w = nrm((C, 1, 3, 3))
        s, t = bn(C)
        p['local_w'].append(w * s[:, None, None, None])
        p['local_t'].append(t)

    # SpatialGCN ------------------------------------------------------------
    k_w = nrm((ci, C)); k_b = nrm((ci,))
    q_w = nrm((ci, C)); q_b = nrm((ci,))
    v_w = nrm((ci, C)); v_b = nrm((ci,))
    p['sp_kqv_w'] = jnp.concatenate([k_w, q_w, v_w], axis=0)
    p['sp_kqv_b'] = jnp.concatenate([k_b, q_b, v_b]).reshape(3 * ci, 1)
    swg_w = nrm((ci, ci)); s_swg, t_swg = bn(ci)
    p['sp_wg_w'] = swg_w * s_swg[:, None]
    p['sp_wg_t'] = t_swg.reshape(ci, 1)
    so_w = nrm((C, ci)); so_b = nrm((C,)); s_so, t_so = bn(C)
    p['sp_out_w'] = so_w * s_so[:, None]
    p['sp_out_b'] = (so_b * s_so + t_so).reshape(C, 1)

    # bottleneck
    p['bn1_w'], p['bn1_t'] = conv3x3_folded(C, C)
    p['bn2_w'] = nrm((outplanes, C))
    p['bn2_b'] = nrm((outplanes,)).reshape(outplanes, 1)
    return p


# ----------------------------------------------------------------------------
if __name__ == "__main__":
    N, Cin, H, W = 2, 4, 16, 16
    interplanes, outplanes = 16, 8

    root = jax.random.PRNGKey(0)
    k_x, k_p = jax.random.split(root)
    x = jax.random.normal(k_x, (N, Cin, H, W), dtype=jnp.float32)
    params = init_params(k_p, Cin, interplanes, outplanes)

    fwd = jax.jit(dualgcn_forward)
    out = jax.block_until_ready(fwd(x, params))

    assert out.shape == (N, outplanes, H, W), out.shape
    assert jnp.all(jnp.isfinite(out))
    print("KERNEL_OK")
</pallas_src>

<mosaic_0001>
module attributes {stable_mosaic.version = 11 : i64} {
  func.func @_conv_mm_kernel(%arg0: i32, %arg1: memref<1x36x256xbf16, #tpu.memory_space<vmem>>, %arg2: memref<16x36xbf16, #tpu.memory_space<vmem>>, %arg3: memref<16x1xf32, #tpu.memory_space<vmem>>, %arg4: memref<1x16x256xbf16, #tpu.memory_space<vmem>>) attributes {dimension_semantics = [#tpu.dimension_semantics<parallel>], iteration_bounds = array<i64: 2>, scalar_prefetch = 0 : i64, scratch_operands = 0 : i64, tpu.core_type = #tpu.core_type<tc>, window_params = [{transform_indices = @transform_0, window_bounds = array<i64: 1, 36, 256>}, {pipeline_mode = #tpu.pipeline_mode<synchronous>, transform_indices = @transform_1, window_bounds = array<i64: 16, 36>}, {pipeline_mode = #tpu.pipeline_mode<synchronous>, transform_indices = @transform_2, window_bounds = array<i64: 16, 1>}, {transform_indices = @transform_3, window_bounds = array<i64: 1, 16, 256>}]} {
    %c0 = arith.constant 0 : index
    %c0_0 = arith.constant 0 : index
    %0 = vector.load %arg2[%c0, %c0_0] : memref<16x36xbf16, #tpu.memory_space<vmem>>, vector<16x36xbf16>
    %c0_1 = arith.constant 0 : index
    %c0_2 = arith.constant 0 : index
    %c0_3 = arith.constant 0 : index
    %1 = vector.load %arg1[%c0_1, %c0_2, %c0_3] : memref<1x36x256xbf16, #tpu.memory_space<vmem>>, vector<1x36x256xbf16>
    %2 = vector.shape_cast %1 : vector<1x36x256xbf16> to vector<36x256xbf16>
    %cst = arith.constant dense<0.000000e+00> : vector<16x256xf32>
    %3 = tpu.matmul %0, %2, %cst {dimension_numbers = #tpu.dot_dimension_numbers<[1], [0], [0], [1], [0, 0, 1, 1], [], []>} : vector<16x36xbf16>, vector<36x256xbf16>, vector<16x256xf32> -> vector<16x256xf32>
    %c0_4 = arith.constant 0 : index
    %c0_5 = arith.constant 0 : index
    %4 = vector.load %arg3[%c0_4, %c0_5] : memref<16x1xf32, #tpu.memory_space<vmem>>, vector<16x1xf32>
    %5 = vector.broadcast %4 : vector<16x1xf32> to vector<16x256xf32>
    %6 = arith.addf %3, %5 : vector<16x256xf32>
    %cst_6 = arith.constant 0.000000e+00 : f32
    %7 = vector.broadcast %cst_6 : f32 to vector<16x256xf32>
    %8 = arith.maximumf %6, %7 : vector<16x256xf32>
    %9 = arith.truncf %8 : vector<16x256xf32> to vector<16x256xbf16>
    %c0_7 = arith.constant 0 : index
    %c0_8 = arith.constant 0 : index
    %c0_9 = arith.constant 0 : index
    %10 = vector.load %arg4[%c0_7, %c0_8, %c0_9] : memref<1x16x256xbf16, #tpu.memory_space<vmem>>, vector<1x16x256xbf16>
    %11 = vector.shape_cast %10 : vector<1x16x256xbf16> to vector<16x256xbf16>
    %12 = vector.shape_cast %9 : vector<16x256xbf16> to vector<1x16x256xbf16>
    tpu.vector_store %arg4[%c0_7, %c0_8, %c0_9], %12 {strides = array<i32>} : memref<1x16x256xbf16, #tpu.memory_space<vmem>>, vector<1x16x256xbf16>,
    return
  }
  func.func @transform_0(%arg0: i32) -> (i32, i32, i32) {
    %c0_i32 = arith.constant 0 : i32
    %c0_i32_0 = arith.constant 0 : i32
    %c0_i32_1 = arith.constant 0 : i32
    return %arg0, %c0_i32, %c0_i32_0 : i32, i32, i32
  }
  func.func @transform_1(%arg0: i32) -> (i32, i32) {
    %c0_i32 = arith.constant 0 : i32
    %c0_i32_0 = arith.constant 0 : i32
    %c0_i32_1 = arith.constant 0 : i32
    return %c0_i32, %c0_i32_0 : i32, i32
  }
  func.func @transform_2(%arg0: i32) -> (i32, i32) {
    %c0_i32 = arith.constant 0 : i32
    %c0_i32_0 = arith.constant 0 : i32
    %c0_i32_1 = arith.constant 0 : i32
    return %c0_i32, %c0_i32_0 : i32, i32
  }
  func.func @transform_3(%arg0: i32) -> (i32, i32, i32) {
    %c0_i32 = arith.constant 0 : i32
    %c0_i32_0 = arith.constant 0 : i32
    %c0_i32_1 = arith.constant 0 : i32
    return %arg0, %c0_i32, %c0_i32_0 : i32, i32, i32
  }
}

module attributes {stable_mosaic.version = 11 : i64} {
  func.func @_cgcn_kernel(%arg0: i32, %arg1: memref<1x16x256xbf16, #tpu.memory_space<vmem>>, %arg2: memref<12x16xbf16, #tpu.memory_space<vmem>>, %arg3: memref<12x1xf32, #tpu.memory_space<vmem>>, %arg4: memref<4x4xf32, #tpu.memory_space<vmem>>, %arg5: memref<1x4xf32, #tpu.memory_space<vmem>>, %arg6: memref<8x8xf32, #tpu.memory_space<vmem>>, %arg7: memref<8x1xf32, #tpu.memory_space<vmem>>, %arg8: memref<16x8xf32, #tpu.memory_space<vmem>>, %arg9: memref<16x1xf32, #tpu.memory_space<vmem>>, %arg10: memref<1x16x256xbf16, #tpu.memory_space<vmem>>) attributes {dimension_semantics = [#tpu.dimension_semantics<parallel>], iteration_bounds = array<i64: 2>, scalar_prefetch = 0 : i64, scratch_operands = 0 : i64, tpu.core_type = #tpu.core_type<tc>, window_params = [{transform_indices = @transform_0, window_bounds = array<i64: 1, 16, 256>}, {pipeline_mode = #tpu.pipeline_mode<synchronous>, transform_indices = @transform_1, window_bounds = array<i64: 12, 16>}, {pipeline_mode = #tpu.pipeline_mode<synchronous>, transform_indices = @transform_2, window_bounds = array<i64: 12, 1>}, {pipeline_mode = #tpu.pipeline_mode<synchronous>, transform_indices = @transform_3, window_bounds = array<i64: 4, 4>}, {pipeline_mode = #tpu.pipeline_mode<synchronous>, transform_indices = @transform_4, window_bounds = array<i64: 1, 4>}, {pipeline_mode = #tpu.pipeline_mode<synchronous>, transform_indices = @transform_5, window_bounds = array<i64: 8, 8>}, {pipeline_mode = #tpu.pipeline_mode<synchronous>, transform_indices = @transform_6, window_bounds = array<i64: 8, 1>}, {pipeline_mode = #tpu.pipeline_mode<synchronous>, transform_indices = @transform_7, window_bounds = array<i64: 16, 8>}, {pipeline_mode = #tpu.pipeline_mode<synchronous>, transform_indices = @transform_8, window_bounds = array<i64: 16, 1>}, {transform_indices = @transform_9, window_bounds = array<i64: 1, 16, 256>}]} {
    %c0 = arith.constant 0 : index
    %c0_0 = arith.constant 0 : index
    %c0_1 = arith.constant 0 : index
    %0 = vector.load %arg1[%c0, %c0_0, %c0_1] : memref<1x16x256xbf16, #tpu.memory_space<vmem>>, vector<1x16x256xbf16>
    %1 = vector.shape_cast %0 : vector<1x16x256xbf16> to vector<16x256xbf16>
    %c0_2 = arith.constant 0 : index
    %c0_3 = arith.constant 0 : index
    %2 = vector.load %arg2[%c0_2, %c0_3] : memref<12x16xbf16, #tpu.memory_space<vmem>>, vector<12x16xbf16>
    %cst = arith.constant dense<0.000000e+00> : vector<12x256xf32>
    %3 = tpu.matmul %2, %1, %cst {dimension_numbers = #tpu.dot_dimension_numbers<[1], [0], [0], [1], [0, 0, 1, 1], [], []>} : vector<12x16xbf16>, vector<16x256xbf16>, vector<12x256xf32> -> vector<12x256xf32>
    %c0_4 = arith.constant 0 : index
    %c0_5 = arith.constant 0 : index
    %4 = vector.load %arg3[%c0_4, %c0_5] : memref<12x1xf32, #tpu.memory_space<vmem>>, vector<12x1xf32>
    %5 = vector.broadcast %4 : vector<12x1xf32> to vector<12x256xf32>
    %6 = arith.addf %3, %5 : vector<12x256xf32>
    %7 = vector.extract_strided_slice %6 {offsets = [0, 0], sizes = [8, 256], strides = [1, 1]} : vector<12x256xf32> to vector<8x256xf32>
    %8 = vector.extract_strided_slice %6 {offsets = [8, 0], sizes = [4, 256], strides = [1, 1]} : vector<12x256xf32> to vector<4x256xf32>
    %cst_6 = arith.constant dense<0.000000e+00> : vector<8x4xf32>
    %9 = tpu.matmul %7, %8, %cst_6 {dimension_numbers = #tpu.dot_dimension_numbers<[1], [1], [0], [0], [0, 0, 1, 0], [], []>} : vector<8x256xf32>, vector<4x256xf32>, vector<8x4xf32> -> vector<8x4xf32>
    %c0_7 = arith.constant 0 : index
    %c0_8 = arith.constant 0 : index
    %10 = vector.load %arg4[%c0_7, %c0_8] : memref<4x4xf32, #tpu.memory_space<vmem>>, vector<4x4xf32>
    %cst_9 = arith.constant dense<0.000000e+00> : vector<8x4xf32>
    %11 = tpu.matmul %9, %10, %cst_9 {dimension_numbers = #tpu.dot_dimension_numbers<[1], [0], [0], [1], [0, 0, 1, 1], [], []>} : vector<8x4xf32>, vector<4x4xf32>, vector<8x4xf32> -> vector<8x4xf32>
    %c0_10 = arith.constant 0 : index
    %c0_11 = arith.constant 0 : index
    %12 = vector.load %arg5[%c0_10, %c0_11] : memref<1x4xf32, #tpu.memory_space<vmem>>, vector<1x4xf32>
    %13 = vector.broadcast %12 : vector<1x4xf32> to vector<8x4xf32>
    %14 = arith.addf %11, %13 : vector<8x4xf32>
    %15 = arith.addf %14, %9 : vector<8x4xf32>
    %c0_12 = arith.constant 0 : index
    %c0_13 = arith.constant 0 : index
    %16 = vector.load %arg6[%c0_12, %c0_13] : memref<8x8xf32, #tpu.memory_space<vmem>>, vector<8x8xf32>
    %cst_14 = arith.constant dense<0.000000e+00> : vector<8x4xf32>
    %17 = tpu.matmul %16, %15, %cst_14 {dimension_numbers = #tpu.dot_dimension_numbers<[1], [0], [0], [1], [0, 0, 1, 1], [], []>} : vector<8x8xf32>, vector<8x4xf32>, vector<8x4xf32> -> vector<8x4xf32>
    %c0_15 = arith.constant 0 : index
    %c0_16 = arith.constant 0 : index
    %18 = vector.load %arg7[%c0_15, %c0_16] : memref<8x1xf32, #tpu.memory_space<vmem>>, vector<8x1xf32>
    %19 = vector.broadcast %18 : vector<8x1xf32> to vector<8x4xf32>
    %20 = arith.addf %17, %19 : vector<8x4xf32>
    %cst_17 = arith.constant dense<0.000000e+00> : vector<8x256xf32>
    %21 = tpu.matmul %20, %8, %cst_17 {dimension_numbers = #tpu.dot_dimension_numbers<[1], [0], [0], [1], [0, 0, 1, 1], [], []>} : vector<8x4xf32>, vector<4x256xf32>, vector<8x256xf32> -> vector<8x256xf32>
    %c0_18 = arith.constant 0 : index
    %c0_19 = arith.constant 0 : index
    %22 = vector.load %arg8[%c0_18, %c0_19] : memref<16x8xf32, #tpu.memory_space<vmem>>, vector<16x8xf32>
    %cst_20 = arith.constant dense<0.000000e+00> : vector<16x256xf32>
    %23 = tpu.matmul %22, %21, %cst_20 {dimension_numbers = #tpu.dot_dimension_numbers<[1], [0], [0], [1], [0, 0, 1, 1], [], []>} : vector<16x8xf32>, vector<8x256xf32>, vector<16x256xf32> -> vector<16x256xf32>
    %c0_21 = arith.constant 0 : index
    %c0_22 = arith.constant 0 : index
    %24 = vector.load %arg9[%c0_21, %c0_22] : memref<16x1xf32, #tpu.memory_space<vmem>>, vector<16x1xf32>
    %25 = vector.broadcast %24 : vector<16x1xf32> to vector<16x256xf32>
    %26 = arith.addf %23, %25 : vector<16x256xf32>
    %27 = arith.extf %1 : vector<16x256xbf16> to vector<16x256xf32>
    %28 = arith.addf %26, %27 : vector<16x256xf32>
    %cst_23 = arith.constant 0.000000e+00 : f32
    %29 = vector.broadcast %cst_23 : f32 to vector<16x256xf32>
    %30 = arith.maximumf %28, %29 : vector<16x256xf32>
    %31 = arith.truncf %30 : vector<16x256xf32> to vector<16x256xbf16>
    %c0_24 = arith.constant 0 : index
    %c0_25 = arith.constant 0 : index
    %c0_26 = arith.constant 0 : index
    %32 = vector.load %arg10[%c0_24, %c0_25, %c0_26] : memref<1x16x256xbf16, #tpu.memory_space<vmem>>, vector<1x16x256xbf16>
    %33 = vector.shape_cast %32 : vector<1x16x256xbf16> to vector<16x256xbf16>
    %34 = vector.shape_cast %31 : vector<16x256xbf16> to vector<1x16x256xbf16>
    tpu.vector_store %arg10[%c0_24, %c0_25, %c0_26], %34 {strides = array<i32>} : memref<1x16x256xbf16, #tpu.memory_space<vmem>>, vector<1x16x256xbf16>,
    return
  }
  func.func @transform_0(%arg0: i32) -> (i32, i32, i32) {
    %c0_i32 = arith.constant 0 : i32
    %c0_i32_0 = arith.constant 0 : i32
    %c0_i32_1 = arith.constant 0 : i32
    return %arg0, %c0_i32, %c0_i32_0 : i32, i32, i32
  }
  func.func @transform_1(%arg0: i32) -> (i32, i32) {
    %c0_i32 = arith.constant 0 : i32
    %c0_i32_0 = arith.constant 0 : i32
    %c0_i32_1 = arith.constant 0 : i32
    return %c0_i32, %c0_i32_0 : i32, i32
  }
  func.func @transform_2(%arg0: i32) -> (i32, i32) {
    %c0_i32 = arith.constant 0 : i32
    %c0_i32_0 = arith.constant 0 : i32
    %c0_i32_1 = arith.constant 0 : i32
    return %c0_i32, %c0_i32_0 : i32, i32
  }
  func.func @transform_3(%arg0: i32) -> (i32, i32) {
    %c0_i32 = arith.constant 0 : i32
    %c0_i32_0 = arith.constant 0 : i32
    %c0_i32_1 = arith.constant 0 : i32
    return %c0_i32, %c0_i32_0 : i32, i32
  }
  func.func @transform_4(%arg0: i32) -> (i32, i32) {
    %c0_i32 = arith.constant 0 : i32
    %c0_i32_0 = arith.constant 0 : i32
    %c0_i32_1 = arith.constant 0 : i32
    return %c0_i32, %c0_i32_0 : i32, i32
  }
  func.func @transform_5(%arg0: i32) -> (i32, i32) {
    %c0_i32 = arith.constant 0 : i32
    %c0_i32_0 = arith.constant 0 : i32
    %c0_i32_1 = arith.constant 0 : i32
    return %c0_i32, %c0_i32_0 : i32, i32
  }
  func.func @transform_6(%arg0: i32) -> (i32, i32) {
    %c0_i32 = arith.constant 0 : i32
    %c0_i32_0 = arith.constant 0 : i32
    %c0_i32_1 = arith.constant 0 : i32
    return %c0_i32, %c0_i32_0 : i32, i32
  }
  func.func @transform_7(%arg0: i32) -> (i32, i32) {
    %c0_i32 = arith.constant 0 : i32
    %c0_i32_0 = arith.constant 0 : i32
    %c0_i32_1 = arith.constant 0 : i32
    return %c0_i32, %c0_i32_0 : i32, i32
  }
  func.func @transform_8(%arg0: i32) -> (i32, i32) {
    %c0_i32 = arith.constant 0 : i32
    %c0_i32_0 = arith.constant 0 : i32
    %c0_i32_1 = arith.constant 0 : i32
    return %c0_i32, %c0_i32_0 : i32, i32
  }
  func.func @transform_9(%arg0: i32) -> (i32, i32, i32) {
    %c0_i32 = arith.constant 0 : i32
    %c0_i32_0 = arith.constant 0 : i32
    %c0_i32_1 = arith.constant 0 : i32
    return %arg0, %c0_i32, %c0_i32_0 : i32, i32, i32
  }
}

module attributes {stable_mosaic.version = 11 : i64} {
  func.func @_conv_mm_kernel(%arg0: i32, %arg1: memref<1x144x256xbf16, #tpu.memory_space<vmem>>, %arg2: memref<16x144xbf16, #tpu.memory_space<vmem>>, %arg3: memref<16x1xf32, #tpu.memory_space<vmem>>, %arg4: memref<1x16x256xbf16, #tpu.memory_space<vmem>>) attributes {dimension_semantics = [#tpu.dimension_semantics<parallel>], iteration_bounds = array<i64: 2>, scalar_prefetch = 0 : i64, scratch_operands = 0 : i64, tpu.core_type = #tpu.core_type<tc>, window_params = [{transform_indices = @transform_0, window_bounds = array<i64: 1, 144, 256>}, {pipeline_mode = #tpu.pipeline_mode<synchronous>, transform_indices = @transform_1, window_bounds = array<i64: 16, 144>}, {pipeline_mode = #tpu.pipeline_mode<synchronous>, transform_indices = @transform_2, window_bounds = array<i64: 16, 1>}, {transform_indices = @transform_3, window_bounds = array<i64: 1, 16, 256>}]} {
    %c0 = arith.constant 0 : index
    %c0_0 = arith.constant 0 : index
    %0 = vector.load %arg2[%c0, %c0_0] : memref<16x144xbf16, #tpu.memory_space<vmem>>, vector<16x144xbf16>
    %c0_1 = arith.constant 0 : index
    %c0_2 = arith.constant 0 : index
    %c0_3 = arith.constant 0 : index
    %1 = vector.load %arg1[%c0_1, %c0_2, %c0_3] : memref<1x144x256xbf16, #tpu.memory_space<vmem>>, vector<1x144x256xbf16>
    %2 = vector.shape_cast %1 : vector<1x144x256xbf16> to vector<144x256xbf16>
    %cst = arith.constant dense<0.000000e+00> : vector<16x256xf32>
    %3 = tpu.matmul %0, %2, %cst {dimension_numbers = #tpu.dot_dimension_numbers<[1], [0], [0], [1], [0, 0, 1, 1], [], []>} : vector<16x144xbf16>, vector<144x256xbf16>, vector<16x256xf32> -> vector<16x256xf32>
    %c0_4 = arith.constant 0 : index
    %c0_5 = arith.constant 0 : index
    %4 = vector.load %arg3[%c0_4, %c0_5] : memref<16x1xf32, #tpu.memory_space<vmem>>, vector<16x1xf32>
    %5 = vector.broadcast %4 : vector<16x1xf32> to vector<16x256xf32>
    %6 = arith.addf %3, %5 : vector<16x256xf32>
    %cst_6 = arith.constant 0.000000e+00 : f32
    %7 = vector.broadcast %cst_6 : f32 to vector<16x256xf32>
    %8 = arith.maximumf %6, %7 : vector<16x256xf32>
    %9 = arith.truncf %8 : vector<16x256xf32> to vector<16x256xbf16>
    %c0_7 = arith.constant 0 : index
    %c0_8 = arith.constant 0 : index
    %c0_9 = arith.constant 0 : index
    %10 = vector.load %arg4[%c0_7, %c0_8, %c0_9] : memref<1x16x256xbf16, #tpu.memory_space<vmem>>, vector<1x16x256xbf16>
    %11 = vector.shape_cast %10 : vector<1x16x256xbf16> to vector<16x256xbf16>
    %12 = vector.shape_cast %9 : vector<16x256xbf16> to vector<1x16x256xbf16>
    tpu.vector_store %arg4[%c0_7, %c0_8, %c0_9], %12 {strides = array<i32>} : memref<1x16x256xbf16, #tpu.memory_space<vmem>>, vector<1x16x256xbf16>,
    return
  }
  func.func @transform_0(%arg0: i32) -> (i32, i32, i32) {
    %c0_i32 = arith.constant 0 : i32
    %c0_i32_0 = arith.constant 0 : i32
    %c0_i32_1 = arith.constant 0 : i32
    return %arg0, %c0_i32, %c0_i32_0 : i32, i32, i32
  }
  func.func @transform_1(%arg0: i32) -> (i32, i32) {
    %c0_i32 = arith.constant 0 : i32
    %c0_i32_0 = arith.constant 0 : i32
    %c0_i32_1 = arith.constant 0 : i32
    return %c0_i32, %c0_i32_0 : i32, i32
  }
  func.func @transform_2(%arg0: i32) -> (i32, i32) {
    %c0_i32 = arith.constant 0 : i32
    %c0_i32_0 = arith.constant 0 : i32
    %c0_i32_1 = arith.constant 0 : i32
    return %c0_i32, %c0_i32_0 : i32, i32
  }
  func.func @transform_3(%arg0: i32) -> (i32, i32, i32) {
    %c0_i32 = arith.constant 0 : i32
    %c0_i32_0 = arith.constant 0 : i32
    %c0_i32_1 = arith.constant 0 : i32
    return %arg0, %c0_i32, %c0_i32_0 : i32, i32, i32
  }
}

module attributes {stable_mosaic.version = 11 : i64} {
  func.func @_bneck_kernel(%arg0: i32, %arg1: memref<1x144x256xbf16, #tpu.memory_space<vmem>>, %arg2: memref<16x144xbf16, #tpu.memory_space<vmem>>, %arg3: memref<16x1xf32, #tpu.memory_space<vmem>>, %arg4: memref<8x16xf32, #tpu.memory_space<vmem>>, %arg5: memref<8x1xf32, #tpu.memory_space<vmem>>, %arg6: memref<1x8x256xf32, #tpu.memory_space<vmem>>) attributes {dimension_semantics = [#tpu.dimension_semantics<parallel>], iteration_bounds = array<i64: 2>, scalar_prefetch = 0 : i64, scratch_operands = 0 : i64, tpu.core_type = #tpu.core_type<tc>, window_params = [{transform_indices = @transform_0, window_bounds = array<i64: 1, 144, 256>}, {pipeline_mode = #tpu.pipeline_mode<synchronous>, transform_indices = @transform_1, window_bounds = array<i64: 16, 144>}, {pipeline_mode = #tpu.pipeline_mode<synchronous>, transform_indices = @transform_2, window_bounds = array<i64: 16, 1>}, {pipeline_mode = #tpu.pipeline_mode<synchronous>, transform_indices = @transform_3, window_bounds = array<i64: 8, 16>}, {pipeline_mode = #tpu.pipeline_mode<synchronous>, transform_indices = @transform_4, window_bounds = array<i64: 8, 1>}, {transform_indices = @transform_5, window_bounds = array<i64: 1, 8, 256>}]} {
    %c0 = arith.constant 0 : index
    %c0_0 = arith.constant 0 : index
    %0 = vector.load %arg2[%c0, %c0_0] : memref<16x144xbf16, #tpu.memory_space<vmem>>, vector<16x144xbf16>
    %c0_1 = arith.constant 0 : index
    %c0_2 = arith.constant 0 : index
    %c0_3 = arith.constant 0 : index
    %1 = vector.load %arg1[%c0_1, %c0_2, %c0_3] : memref<1x144x256xbf16, #tpu.memory_space<vmem>>, vector<1x144x256xbf16>
    %2 = vector.shape_cast %1 : vector<1x144x256xbf16> to vector<144x256xbf16>
    %cst = arith.constant dense<0.000000e+00> : vector<16x256xf32>
    %3 = tpu.matmul %0, %2, %cst {dimension_numbers = #tpu.dot_dimension_numbers<[1], [0], [0], [1], [0, 0, 1, 1], [], []>} : vector<16x144xbf16>, vector<144x256xbf16>, vector<16x256xf32> -> vector<16x256xf32>
    %c0_4 = arith.constant 0 : index
    %c0_5 = arith.constant 0 : index
    %4 = vector.load %arg3[%c0_4, %c0_5] : memref<16x1xf32, #tpu.memory_space<vmem>>, vector<16x1xf32>
    %5 = vector.broadcast %4 : vector<16x1xf32> to vector<16x256xf32>
    %6 = arith.addf %3, %5 : vector<16x256xf32>
    %cst_6 = arith.constant 0.000000e+00 : f32
    %7 = vector.broadcast %cst_6 : f32 to vector<16x256xf32>
    %8 = arith.maximumf %6, %7 : vector<16x256xf32>
    %c0_7 = arith.constant 0 : index
    %c0_8 = arith.constant 0 : index
    %9 = vector.load %arg4[%c0_7, %c0_8] : memref<8x16xf32, #tpu.memory_space<vmem>>, vector<8x16xf32>
    %cst_9 = arith.constant dense<0.000000e+00> : vector<8x256xf32>
    %10 = tpu.matmul %9, %8, %cst_9 {dimension_numbers = #tpu.dot_dimension_numbers<[1], [0], [0], [1], [0, 0, 1, 1], [], []>} : vector<8x16xf32>, vector<16x256xf32>, vector<8x256xf32> -> vector<8x256xf32>
    %c0_10 = arith.constant 0 : index
    %c0_11 = arith.constant 0 : index
    %11 = vector.load %arg5[%c0_10, %c0_11] : memref<8x1xf32, #tpu.memory_space<vmem>>, vector<8x1xf32>
    %12 = vector.broadcast %11 : vector<8x1xf32> to vector<8x256xf32>
    %13 = arith.addf %10, %12 : vector<8x256xf32>
    %c0_12 = arith.constant 0 : index
    %c0_13 = arith.constant 0 : index
    %c0_14 = arith.constant 0 : index
    %14 = vector.load %arg6[%c0_12, %c0_13, %c0_14] : memref<1x8x256xf32, #tpu.memory_space<vmem>>, vector<1x8x256xf32>
    %15 = vector.shape_cast %14 : vector<1x8x256xf32> to vector<8x256xf32>
    %16 = vector.shape_cast %13 : vector<8x256xf32> to vector<1x8x256xf32>
    tpu.vector_store %arg6[%c0_12, %c0_13, %c0_14], %16 {strides = array<i32>} : memref<1x8x256xf32, #tpu.memory_space<vmem>>, vector<1x8x256xf32>,
    return
  }
  func.func @transform_0(%arg0: i32) -> (i32, i32, i32) {
    %c0_i32 = arith.constant 0 : i32
    %c0_i32_0 = arith.constant 0 : i32
    %c0_i32_1 = arith.constant 0 : i32
    return %arg0, %c0_i32, %c0_i32_0 : i32, i32, i32
  }
  func.func @transform_1(%arg0: i32) -> (i32, i32) {
    %c0_i32 = arith.constant 0 : i32
    %c0_i32_0 = arith.constant 0 : i32
    %c0_i32_1 = arith.constant 0 : i32
    return %c0_i32, %c0_i32_0 : i32, i32
  }
  func.func @transform_2(%arg0: i32) -> (i32, i32) {
    %c0_i32 = arith.constant 0 : i32
    %c0_i32_0 = arith.constant 0 : i32
    %c0_i32_1 = arith.constant 0 : i32
    return %c0_i32, %c0_i32_0 : i32, i32
  }
  func.func @transform_3(%arg0: i32) -> (i32, i32) {
    %c0_i32 = arith.constant 0 : i32
    %c0_i32_0 = arith.constant 0 : i32
    %c0_i32_1 = arith.constant 0 : i32
    return %c0_i32, %c0_i32_0 : i32, i32
  }
  func.func @transform_4(%arg0: i32) -> (i32, i32) {
    %c0_i32 = arith.constant 0 : i32
    %c0_i32_0 = arith.constant 0 : i32
    %c0_i32_1 = arith.constant 0 : i32
    return %c0_i32, %c0_i32_0 : i32, i32
  }
  func.func @transform_5(%arg0: i32) -> (i32, i32, i32) {
    %c0_i32 = arith.constant 0 : i32
    %c0_i32_0 = arith.constant 0 : i32
    %c0_i32_1 = arith.constant 0 : i32
    return %arg0, %c0_i32, %c0_i32_0 : i32, i32, i32
  }
}

module attributes {stable_mosaic.version = 11 : i64} {
  func.func @_sgcn_fuse_kernel(%arg0: i32, %arg1: memref<1x16x4xf32, #tpu.memory_space<vmem>>, %arg2: memref<1x16x256xbf16, #tpu.memory_space<vmem>>, %arg3: memref<24x16xf32, #tpu.memory_space<vmem>>, %arg4: memref<24x1xf32, #tpu.memory_space<vmem>>, %arg5: memref<8x8xf32, #tpu.memory_space<vmem>>, %arg6: memref<8x1xf32, #tpu.memory_space<vmem>>, %arg7: memref<16x8xf32, #tpu.memory_space<vmem>>, %arg8: memref<16x1xf32, #tpu.memory_space<vmem>>, %arg9: memref<4x256xf32, #tpu.memory_space<vmem>>, %arg10: memref<1x16x256xbf16, #tpu.memory_space<vmem>>) attributes {dimension_semantics = [#tpu.dimension_semantics<parallel>], iteration_bounds = array<i64: 2>, scalar_prefetch = 0 : i64, scratch_operands = 0 : i64, tpu.core_type = #tpu.core_type<tc>, window_params = [{transform_indices = @transform_0, window_bounds = array<i64: 1, 16, 4>}, {transform_indices = @transform_1, window_bounds = array<i64: 1, 16, 256>}, {pipeline_mode = #tpu.pipeline_mode<synchronous>, transform_indices = @transform_2, window_bounds = array<i64: 24, 16>}, {pipeline_mode = #tpu.pipeline_mode<synchronous>, transform_indices = @transform_3, window_bounds = array<i64: 24, 1>}, {pipeline_mode = #tpu.pipeline_mode<synchronous>, transform_indices = @transform_4, window_bounds = array<i64: 8, 8>}, {pipeline_mode = #tpu.pipeline_mode<synchronous>, transform_indices = @transform_5, window_bounds = array<i64: 8, 1>}, {pipeline_mode = #tpu.pipeline_mode<synchronous>, transform_indices = @transform_6, window_bounds = array<i64: 16, 8>}, {pipeline_mode = #tpu.pipeline_mode<synchronous>, transform_indices = @transform_7, window_bounds = array<i64: 16, 1>}, {pipeline_mode = #tpu.pipeline_mode<synchronous>, transform_indices = @transform_8, window_bounds = array<i64: 4, 256>}, {transform_indices = @transform_9, window_bounds = array<i64: 1, 16, 256>}]} {
    %c0 = arith.constant 0 : index
    %c0_0 = arith.constant 0 : index
    %c0_1 = arith.constant 0 : index
    %0 = vector.load %arg1[%c0, %c0_0, %c0_1] : memref<1x16x4xf32, #tpu.memory_space<vmem>>, vector<1x16x4xf32>
    %1 = vector.shape_cast %0 : vector<1x16x4xf32> to vector<16x4xf32>
    %c0_2 = arith.constant 0 : index
    %c0_3 = arith.constant 0 : index
    %2 = vector.load %arg3[%c0_2, %c0_3] : memref<24x16xf32, #tpu.memory_space<vmem>>, vector<24x16xf32>
    %cst = arith.constant dense<0.000000e+00> : vector<24x4xf32>
    %3 = tpu.matmul %2, %1, %cst {dimension_numbers = #tpu.dot_dimension_numbers<[1], [0], [0], [1], [0, 0, 1, 1], [], []>} : vector<24x16xf32>, vector<16x4xf32>, vector<24x4xf32> -> vector<24x4xf32>
    %c0_4 = arith.constant 0 : index
    %c0_5 = arith.constant 0 : index
    %4 = vector.load %arg4[%c0_4, %c0_5] : memref<24x1xf32, #tpu.memory_space<vmem>>, vector<24x1xf32>
    %5 = vector.broadcast %4 : vector<24x1xf32> to vector<24x4xf32>
    %6 = arith.addf %3, %5 : vector<24x4xf32>
    %7 = vector.extract_strided_slice %6 {offsets = [0, 0], sizes = [8, 4], strides = [1, 1]} : vector<24x4xf32> to vector<8x4xf32>
    %8 = vector.extract_strided_slice %6 {offsets = [8, 0], sizes = [8, 4], strides = [1, 1]} : vector<24x4xf32> to vector<8x4xf32>
    %9 = vector.extract_strided_slice %6 {offsets = [16, 0], sizes = [8, 4], strides = [1, 1]} : vector<24x4xf32> to vector<8x4xf32>
    %cst_6 = arith.constant dense<0.000000e+00> : vector<8x8xf32>
    %10 = tpu.matmul %8, %9, %cst_6 {dimension_numbers = #tpu.dot_dimension_numbers<[1], [1], [0], [0], [0, 0, 1, 0], [], []>} : vector<8x4xf32>, vector<8x4xf32>, vector<8x8xf32> -> vector<8x8xf32>
    %cst_7 = arith.constant dense<0xFF800000> : vector<8xf32>
    %11 = vector.multi_reduction <maximumf>, %10, %cst_7 [1] : vector<8x8xf32> to vector<8xf32>
    %12 = vector.shape_cast %11 : vector<8xf32> to vector<8x1xf32>
    %13 = vector.broadcast %12 : vector<8x1xf32> to vector<8x8xf32>
    %14 = arith.subf %10, %13 : vector<8x8xf32>
    %15 = math.exp %14 : vector<8x8xf32>
    %cst_8 = arith.constant dense<0.000000e+00> : vector<8xf32>
    %16 = vector.multi_reduction <add>, %15, %cst_8 [1] : vector<8x8xf32> to vector<8xf32>
    %17 = vector.shape_cast %16 : vector<8xf32> to vector<8x1xf32>
    %18 = tpu.reciprocal %17 {approx = true} : vector<8x1xf32> -> vector<8x1xf32>
    %19 = vector.broadcast %18 : vector<8x1xf32> to vector<8x8xf32>
    %20 = arith.mulf %15, %19 : vector<8x8xf32>
    %cst_9 = arith.constant dense<0.000000e+00> : vector<8x4xf32>
    %21 = tpu.matmul %20, %7, %cst_9 {dimension_numbers = #tpu.dot_dimension_numbers<[0], [0], [1], [1], [0, 1, 1, 1], [], []>} : vector<8x8xf32>, vector<8x4xf32>, vector<8x4xf32> -> vector<8x4xf32>
    %c0_10 = arith.constant 0 : index
    %c0_11 = arith.constant 0 : index
    %22 = vector.load %arg5[%c0_10, %c0_11] : memref<8x8xf32, #tpu.memory_space<vmem>>, vector<8x8xf32>
    %cst_12 = arith.constant dense<0.000000e+00> : vector<8x4xf32>
    %23 = tpu.matmul %22, %21, %cst_12 {dimension_numbers = #tpu.dot_dimension_numbers<[1], [0], [0], [1], [0, 0, 1, 1], [], []>} : vector<8x8xf32>, vector<8x4xf32>, vector<8x4xf32> -> vector<8x4xf32>
    %c0_13 = arith.constant 0 : index
    %c0_14 = arith.constant 0 : index
    %24 = vector.load %arg6[%c0_13, %c0_14] : memref<8x1xf32, #tpu.memory_space<vmem>>, vector<8x1xf32>
    %25 = vector.broadcast %24 : vector<8x1xf32> to vector<8x4xf32>
    %26 = arith.addf %23, %25 : vector<8x4xf32>
    %c0_15 = arith.constant 0 : index
    %c0_16 = arith.constant 0 : index
    %27 = vector.load %arg7[%c0_15, %c0_16] : memref<16x8xf32, #tpu.memory_space<vmem>>, vector<16x8xf32>
    %cst_17 = arith.constant dense<0.000000e+00> : vector<16x4xf32>
    %28 = tpu.matmul %27, %26, %cst_17 {dimension_numbers = #tpu.dot_dimension_numbers<[1], [0], [0], [1], [0, 0, 1, 1], [], []>} : vector<16x8xf32>, vector<8x4xf32>, vector<16x4xf32> -> vector<16x4xf32>
    %c0_18 = arith.constant 0 : index
    %c0_19 = arith.constant 0 : index
    %29 = vector.load %arg8[%c0_18, %c0_19] : memref<16x1xf32, #tpu.memory_space<vmem>>, vector<16x1xf32>
    %30 = vector.broadcast %29 : vector<16x1xf32> to vector<16x4xf32>
    %31 = arith.addf %28, %30 : vector<16x4xf32>
    %32 = arith.addf %31, %1 : vector<16x4xf32>
    %cst_20 = arith.constant 0.000000e+00 : f32
    %33 = vector.broadcast %cst_20 : f32 to vector<16x4xf32>
    %34 = arith.maximumf %32, %33 : vector<16x4xf32>
    %c0_21 = arith.constant 0 : index
    %c0_22 = arith.constant 0 : index
    %35 = vector.load %arg9[%c0_21, %c0_22] : memref<4x256xf32, #tpu.memory_space<vmem>>, vector<4x256xf32>
    %cst_23 = arith.constant dense<0.000000e+00> : vector<16x256xf32>
    %36 = tpu.matmul %34, %35, %cst_23 {dimension_numbers = #tpu.dot_dimension_numbers<[1], [0], [0], [1], [0, 0, 1, 1], [], []>} : vector<16x4xf32>, vector<4x256xf32>, vector<16x256xf32> -> vector<16x256xf32>
    %c0_24 = arith.constant 0 : index
    %c0_25 = arith.constant 0 : index
    %c0_26 = arith.constant 0 : index
    %37 = vector.load %arg2[%c0_24, %c0_25, %c0_26] : memref<1x16x256xbf16, #tpu.memory_space<vmem>>, vector<1x16x256xbf16>
    %38 = vector.shape_cast %37 : vector<1x16x256xbf16> to vector<16x256xbf16>
    %39 = arith.extf %38 : vector<16x256xbf16> to vector<16x256xf32>
    %40 = arith.mulf %39, %36 : vector<16x256xf32>
    %41 = arith.addf %40, %39 : vector<16x256xf32>
    %42 = arith.truncf %41 : vector<16x256xf32> to vector<16x256xbf16>
    %c0_27 = arith.constant 0 : index
    %c0_28 = arith.constant 0 : index
    %c0_29 = arith.constant 0 : index
    %43 = vector.load %arg10[%c0_27, %c0_28, %c0_29] : memref<1x16x256xbf16, #tpu.memory_space<vmem>>, vector<1x16x256xbf16>
    %44 = vector.shape_cast %43 : vector<1x16x256xbf16> to vector<16x256xbf16>
    %45 = vector.shape_cast %42 : vector<16x256xbf16> to vector<1x16x256xbf16>
    tpu.vector_store %arg10[%c0_27, %c0_28, %c0_29], %45 {strides = array<i32>} : memref<1x16x256xbf16, #tpu.memory_space<vmem>>, vector<1x16x256xbf16>,
    return
  }
  func.func @transform_0(%arg0: i32) -> (i32, i32, i32) {
    %c0_i32 = arith.constant 0 : i32
    %c0_i32_0 = arith.constant 0 : i32
    %c0_i32_1 = arith.constant 0 : i32
    return %arg0, %c0_i32, %c0_i32_0 : i32, i32, i32
  }
  func.func @transform_1(%arg0: i32) -> (i32, i32, i32) {
    %c0_i32 = arith.constant 0 : i32
    %c0_i32_0 = arith.constant 0 : i32
    %c0_i32_1 = arith.constant 0 : i32
    return %arg0, %c0_i32, %c0_i32_0 : i32, i32, i32
  }
  func.func @transform_2(%arg0: i32) -> (i32, i32) {
    %c0_i32 = arith.constant 0 : i32
    %c0_i32_0 = arith.constant 0 : i32
    %c0_i32_1 = arith.constant 0 : i32
    return %c0_i32, %c0_i32_0 : i32, i32
  }
  func.func @transform_3(%arg0: i32) -> (i32, i32) {
    %c0_i32 = arith.constant 0 : i32
    %c0_i32_0 = arith.constant 0 : i32
    %c0_i32_1 = arith.constant 0 : i32
    return %c0_i32, %c0_i32_0 : i32, i32
  }
  func.func @transform_4(%arg0: i32) -> (i32, i32) {
    %c0_i32 = arith.constant 0 : i32
    %c0_i32_0 = arith.constant 0 : i32
    %c0_i32_1 = arith.constant 0 : i32
    return %c0_i32, %c0_i32_0 : i32, i32
  }
  func.func @transform_5(%arg0: i32) -> (i32, i32) {
    %c0_i32 = arith.constant 0 : i32
    %c0_i32_0 = arith.constant 0 : i32
    %c0_i32_1 = arith.constant 0 : i32
    return %c0_i32, %c0_i32_0 : i32, i32
  }
  func.func @transform_6(%arg0: i32) -> (i32, i32) {
    %c0_i32 = arith.constant 0 : i32
    %c0_i32_0 = arith.constant 0 : i32
    %c0_i32_1 = arith.constant 0 : i32
    return %c0_i32, %c0_i32_0 : i32, i32
  }
  func.func @transform_7(%arg0: i32) -> (i32, i32) {
    %c0_i32 = arith.constant 0 : i32
    %c0_i32_0 = arith.constant 0 : i32
    %c0_i32_1 = arith.constant 0 : i32
    return %c0_i32, %c0_i32_0 : i32, i32
  }
  func.func @transform_8(%arg0: i32) -> (i32, i32) {
    %c0_i32 = arith.constant 0 : i32
    %c0_i32_0 = arith.constant 0 : i32
    %c0_i32_1 = arith.constant 0 : i32
    return %c0_i32, %c0_i32_0 : i32, i32
  }
  func.func @transform_9(%arg0: i32) -> (i32, i32, i32) {
    %c0_i32 = arith.constant 0 : i32
    %c0_i32_0 = arith.constant 0 : i32
    %c0_i32_1 = arith.constant 0 : i32
    return %arg0, %c0_i32, %c0_i32_0 : i32, i32, i32
  }
}

</mosaic_0001>

<bundles_post_ra>
// kernel: dualgcn_forward.5
= control target key start
LH: loop header
LB: loop body
LE: loop exit
PB: predicated region body
PF: predicated region fallthrough
CT: control target
= control target key end

     0   :  { %s421_s12 = smov 0   ;;  %s451_s0 = inlined_call_operand.vmem [shape: bf16[2,36,256], index: 0, kind: input, shape index: {}]   ;;  %s452_s1 = inlined_call_operand.vmem [shape: bf16[16,36], index: 1, kind: input, shape index: {}]   ;;  %s453_s2 = inlined_call_operand.vmem [shape: f32[16,1], index: 2, kind: input, shape index: {}]   ;;  %s454_s3 = inlined_call_operand.vmem [shape: bf16[2,16,256], index: 3, kind: output, shape index: {}]  }
   0x1 LB: > { %s348_s13 = sadd.s32 4294967295, %s398_s12   ;;  %p352_p0 = scmp.ge.s32.totalorder %s398_s12, 1  ;;  %s398_s12 = sphi %s421_s12, %s13_s12  }
   0x2   : > { %p137_p1 = scmp.lt.s32.totalorder %s398_s12, 3 }
   0x4   : > { %p138_p2 = pnand %p352_p0, %p137_p1 }
   0x5   : > { %p161_p3 = scmp.lt.s32.totalorder (!%p138_p2), %s348_s13, 1 }
   0x6   : > { %141 = sbr.rel (%p138_p2) target bundleno = 236 (0xec), region = 32 }
   0xb   : > { %v400_v0 = vmov 0   ;;  %v179_v1 = vld [vmem:[%s453_s2] sm:$0xff]  ;;  %s456_s13 = smov (!%p161_p3, %s348_s13), 1  ;;  %v180_v2 = vld [vmem:[%s453_s2 + $0x8] sm:$0xff]  ;;  %vm225_vm0 = vcmask 1041408   ;;  %vm221_vm1 = vcmask 293888  }
   0xc   : > { %264 = vmatprep.mubr.bf16.mxu0 %v400_v0  ;;  %382 = vset.pattern.permute.xlu0 %v400_v0  ;;  %s372_s18 = smul.u32 40, %s456_s13  ;;  %v391_v11 = vld [vmem:[%s452_s1] sm:$0xff]   ;;  %s369_s24 = sshll.u32 %s456_s13, 4 }
   0xd   : > { %183 = vperm.xlu0 %382, %v179_v1   ;;  %s170_s27 = scalar_lea.vmem %s454_s3, %s369_s24 }
   0xe   : > { %s165_s21 = scalar_lea.vmem %s451_s0, %s372_s18 }
   0xf   : > { %v178_v3 = vld [vmem:[%s165_s21 + $0x20] sm:$0x33]  ;;  %v385_v6 = vld [vmem:[%s165_s21 + $0x14] ss:$8 sps:$4 sm:$0xff]   ;;  %v387_v8 = vld [vmem:[%s165_s21 + $0x10] ss:$8 sps:$4 sm:$0xff]  }
  0x10   : > { %v362_v4 = vcombine.high %v178_v3, %v178_v3  ;;  %v361_v5 = vcombine.low %v178_v3, %v178_v3  ;;  %v388_v9 = vld [vmem:[%s165_s21 + $0x4] ss:$8 sps:$4 sm:$0xff]   ;;  %v390_v10 = vld [vmem:[%s165_s21] ss:$8 sps:$4 sm:$0xff]  }
  0x11   : > { %188 = vperm.xlu0 %382, %v180_v2  }
  0x12   : > { %363 = vmatprep.subr.msk.bf16.mxu0 %vm225_vm0, %v362_v4  ;;  %v227_v7 = vsel %vm225_vm0, %v361_v5, 0 }
  0x13   : > { %243 = vmatpush1.bf16.msra.mxu0 %v227_v7 }
  0x14   : > { %244 = vmatprep.subr.bf16.mxu0 %v385_v6 }
  0x17   : > { %245 = vmatpush1.bf16.msra.mxu0 %v387_v8 }
  0x18   : > { %246 = vmatprep.subr.bf16.mxu0 %v388_v9 }
  0x1b   : > { %247 = vmatpush1.bf16.msra.mxu0 %v390_v10 }
  0x1e   : > { %364 = vmatmul.mubr.msk.bf16.vlgmr.msra.gmra.mxu0 %vm221_vm1, %v391_v11 }
  0x88   : > { %v184_v12 = vpop.permute.xlu0 %183 }
  0x8c   : > { %v189_v17 = vpop.permute.xlu0 %188 }
  0xde   : > { %v266_v13 = vpop.f32.mrf.mxu0 }
  0xdf   : > { %v267_v14 = vadd.f32 %v266_v13, %v184_v12 }
  0xe0   : > { %v268_v15 = vpop.f32.mrf.mxu0 }
  0xe1   : > { %v269_v16 = vadd.f32 %v268_v15, %v184_v12  ;;  %v275_v19 = vmax.f32 %v267_v14, 0.0 }
  0xe2   : > { %v270_v18 = vpop.f32.mrf.mxu0 }
  0xe3   : > { %v276_v20 = vmax.f32 %v269_v16, 0.0  ;;  %v271_v21 = vadd.f32 %v270_v18, %v189_v17 }
  0xe4   : > { %v272_v22 = vpop.f32.mrf.mxu0 }
  0xe5   : > { %v370_v23 = vpack.c.bf16 %v276_v20, %v275_v19  ;;  %v273_v24 = vadd.f32 %v272_v22, %v189_v17  ;;  %v277_v25 = vmax.f32 %v271_v21, 0.0 }
  0xe7   : > { %291 = vst [vmem:[%s170_s27] sm:$0xff] %v370_v23  ;;  %v278_v26 = vmax.f32 %v273_v24, 0.0 }
  0xe9   : > { %v371_v27 = vpack.c.bf16 %v278_v26, %v277_v25 }
  0xeb   : > { %292 = vst [vmem:[%s170_s27 + $0x8] sm:$0xff] %v371_v27 }
  0xec PF: > { %s13_s12 = sadd.s32 1, %s398_s12  }
  0xed   : > { %p10_p4 = scmp.ge.s32.totalorder %s13_s12, 4  }
  0xef   :  { %12 = sbr.rel (!%p10_p4) target bundleno = 1 (0x1), region = 62 }

// kernel: dualgcn_forward.6
= control target key start
LH: loop header
LB: loop body
LE: loop exit
PB: predicated region body
PF: predicated region fallthrough
CT: control target
= control target key end

     0   :  { %s1029_s30 = smov 0   ;;  %s1106_s0 = inlined_call_operand.vmem [shape: bf16[2,16,256], index: 0, kind: input, shape index: {}]   ;;  %s1107_s1 = inlined_call_operand.vmem [shape: bf16[12,16], index: 1, kind: input, shape index: {}]   ;;  %s1108_s2 = inlined_call_operand.vmem [shape: f32[12,1], index: 2, kind: input, shape index: {}]   ;;  %s1109_s3 = inlined_call_operand.vmem [shape: f32[4,4], index: 3, kind: input, shape index: {}]   ;;  %s1110_s4 = inlined_call_operand.vmem [shape: f32[1,4], index: 4, kind: input, shape index: {}]   ;;  %s1111_s5 = inlined_call_operand.vmem [shape: f32[8,8], index: 5, kind: input, shape index: {}]   ;;  %s1112_s6 = inlined_call_operand.vmem [shape: f32[8,1], index: 6, kind: input, shape index: {}]   ;;  %s1113_s7 = inlined_call_operand.vmem [shape: f32[16,8], index: 7, kind: input, shape index: {}]   ;;  %s1114_s8 = inlined_call_operand.vmem [shape: f32[16,1], index: 8, kind: input, shape index: {}]   ;;  %s1115_s9 = inlined_call_operand.vmem [shape: bf16[2,16,256], index: 9, kind: output, shape index: {}]  }
   0x1 LB: > { %s908_s10 = sadd.s32 4294967295, %s974_s30   ;;  %p912_p0 = scmp.ge.s32.totalorder %s974_s30, 1  ;;  %s974_s30 = sphi %s1029_s30, %s19_s30  }
   0x2   : > { %p287_p1 = scmp.lt.s32.totalorder %s974_s30, 3 }
   0x4   : > { %p288_p2 = pnand %p912_p0, %p287_p1 }
   0x5   : > { %p323_p3 = scmp.lt.s32.totalorder (!%p288_p2), %s908_s10, 1 }
   0x6   : > { %291 = sbr.rel (%p288_p2) target bundleno = 1217 (0x4c1), region = 56 }
   0xb   : > { %v976_v0 = vmov 0   ;;  %v339_v1 = vld [vmem:[%s1108_s2 + $0x8] sm:$0xf]  ;;  %s1117_s10 = smov (!%p323_p3, %s908_s10), 1  ;;  %v338_v2 = vld [vmem:[%s1108_s2] sm:$0xff]  ;;  %vm365_vm0 = vcmask 130048  }
   0xc   : > { %401 = vmatprep.mubr.bf16.mxu0 %v976_v0  ;;  %963 = vset.pattern.permute.xlu0 %v976_v0  ;;  %s934_s15 = sshll.u32 %s1117_s10, 4  ;;  %v733_v7 = vld [vmem:[%s1114_s8 + $0x8] sm:$0xff]  ;;  %v967_v8 = vld [vmem:[%s1107_s1] sm:$0x3f]   ;;  %v977_v9 = vmov 0.0   ;;  %vm494_vm1 = vcmask 1043456  }
   0xd   : > { %347 = vperm.xlu0 %963, %v339_v1   ;;  %964 = vset.pattern.permute.xlu1 %v976_v0  ;;  %s327_s18 = scalar_lea.vmem %s1106_s0, %s934_s15  ;;  %v482_v20 = vld [vmem:[%s1109_s3] sm:$0xf]  ;;  %vm978_vm2 = vmmov 0   ;;  %vm490_vm3 = vcmask 31744   ;;  %vm576_vm4 = vcmask 64512   ;;  %v731_v38 = vld [vmem:[%s1113_s7 + $0x8] sm:$0xff]  ;;  %s332_s21 = scalar_lea.vmem %s1115_s9, %s934_s15 }
   0xe   : > { %v1051_v3 = vld [vmem:[%s327_s18] sm:$0xff]  ;;  %v1053_v4 = vld [vmem:[%s327_s18 + $0x8] sm:$0xff] }
   0xf   : > { %v919_v5 = vcombine.high %v1051_v3, %v1053_v4  ;;  %v918_v6 = vcombine.low %v1051_v3, %v1053_v4  ;;  %v570_v23 = vld [vmem:[%s1112_s6] sm:$0xff]  ;;  %v827_v39 = vunpack.c.l.bf16 %v1051_v3  ;;  %v828_v43 = vunpack.c.h.bf16 %v1051_v3 }
  0x10   : > { %573 = vperm.xlu1 %964, %v570_v23   ;;  %v732_v24 = vld [vmem:[%s1114_s8] sm:$0xff]  ;;  %v829_v47 = vunpack.c.l.bf16 %v1053_v4  ;;  %v830_v52 = vunpack.c.h.bf16 %v1053_v4 }
  0x11   : > { %342 = vperm.xlu0 %963, %v338_v2   ;;  %383 = vmatprep.subr.bf16.mxu0 %v919_v5  ;;  %v921_v25 = vld [vmem:[%s1110_s4] ss:$0 sm:$0xff] }
  0x12   : > { %384 = vmatpush1.bf16.msra.mxu0 %v918_v6  ;;  %v569_v30 = vld [vmem:[%s1111_s5] sm:$0xff] }
  0x13   : > { %v730_v37 = vld [vmem:[%s1113_s7] sm:$0xff] }
  0x14   : > { %736 = vperm.xlu1 %964, %v732_v24  }
  0x15   : > { %741 = vperm.xlu0 %963, %v733_v7   ;;  %920 = vmatmul.mubr.msk.bf16.vlgmr.msra.gmra.mxu0 %vm365_vm0, %v967_v8 }
  0x16   : > { %814 = vmatprep.mubr.f32.mxu0 %v977_v9 }
  0x88   : > { %v348_v10 = vpop.permute.xlu0 %347 }
  0x8b   : > { %v574_v31 = vpop.permute.xlu1 %573 }
  0x8c   : > { %v343_v12 = vpop.permute.xlu0 %342 }
  0x8f   : > { %v737_v40 = vpop.permute.xlu1 %736 }
  0x90   : > { %v742_v48 = vpop.permute.xlu0 %741 }
  0xd5   : > { %v403_v11 = vpop.f32.mrf.mxu0 }
  0xd6   : > { %v404_v19 = vadd.f32 %v403_v11, %v343_v12 }
  0xd7   : > { %v405_v13 = vpop.f32.mrf.mxu0 }
  0xd8   : > { %v406_v14 = vadd.f32 %v405_v13, %v343_v12 }
  0xd9   : > { %v407_v15 = vpop.f32.mrf.mxu0 }
  0xda   : > { %476 = vmatprep.mubr.f32.mxu1 %v406_v14  ;;  %v408_v18 = vadd.f32 %v407_v15, %v348_v10 }
  0xdb   : > { %v409_v16 = vpop.f32.mrf.mxu0 }
  0xdc   : > { %v410_v17 = vadd.f32 %v409_v16, %v348_v10 }
  0xde   : > { %442 = vmatprep.subr.mxu1 %v410_v17 }
  0xdf   : > { %443 = vmatpush1.xpose.msra.mxu1 %v408_v18 }
  0xe0   : > { %942 = vmatprep.subr.mxu1 %v977_v9 }
  0xe2   : > { %477 = vmatmul.mubr.f32.vlgmr.msra.gmra.mxu1 %v404_v19 }
  0xe3   : > { %943 = vmatpush3.msk.msra.mxu1 %vm494_vm1, %v482_v20  ;;  %944 = vmatprep.mubr.msk.f32.mxu1 %vm978_vm2, %v977_v9 }
  0xe4   : > { %947 = vmatprep.subr.mxu1 %v977_v9 }
 0x1a2   : > { %v478_v21 = vpop.f32.mrf.mxu1 }
 0x1a3   : > { %945 = vmatmul.mubr.msk.f32.vlgmr.msra.gmra.mxu1 %vm490_vm3, %v478_v21 }
 0x1a4   : > { %v480_v22 = vpop.f32.mrf.mxu1  ;;  %949 = vmatprep.mubr.msk.f32.mxu1 %vm978_vm2, %v977_v9 }
 0x263   : > { %v564_v26 = vpop.f32.mrf.mxu1 }
 0x264   : > { %v565_v27 = vadd.f32 %v921_v25, %v564_v26 }
 0x265   : > { %v946_v28 = vpop.f32.mrf.mxu1 }
 0x266   : > { %v568_v29 = vadd.f32 %v565_v27, %v478_v21 }
 0x268   : > { %948 = vmatpush3.msra.mxu1 %v568_v29 }
 0x269   : > { %950 = vmatmul.mubr.msk.f32.vlgmr.msra.gmra.mxu1 %vm576_vm4, %v569_v30  ;;  %925 = vmatprep.subr.msk.mxu1 %vm494_vm1, %v410_v17 }
 0x26a   : > { %926 = vmatpush1.msk.msra.mxu1 %vm494_vm1, %v408_v18  ;;  %723 = vmatprep.mubr.f32.mxu1 %v977_v9 }
 0x329   : > { %v646_v32 = vpop.f32.mrf.mxu1 }
 0x32a   : > { %v647_v33 = vadd.f32 %v646_v32, %v574_v31 }
 0x32b   : > { %v951_v34 = vpop.f32.mrf.mxu1 }
 0x32c   : > { %927 = vmatmul.mubr.msk.f32.vlgmr.msra.gmra.mxu1 %vm490_vm3, %v647_v33 }
 0x3ec   : > { %v725_v35 = vpop.f32.mrf.mxu1 }
 0x3ee   : > { %v727_v36 = vpop.f32.mrf.mxu1 }
 0x3ef   : > { %780 = vmatprep.subr.mxu0 %v727_v36 }
 0x3f0   : > { %781 = vmatpush1.msra.mxu0 %v725_v35 }
 0x3f1   : > { %928 = vmatmul.mubr.msk.f32.vlgmr.msra.gmra.mxu0 %vm576_vm4, %v730_v37 }
 0x3f2   : > { %820 = vmatprep.mubr.f32.mxu0 %v977_v9 }
 0x3f5   : > { %929 = vmatmul.mubr.msk.f32.gmra.mxu0 %vm576_vm4, %v731_v38 }
 0x4b1   : > { %v816_v41 = vpop.f32.mrf.mxu0 }
 0x4b2   : > { %v817_v42 = vadd.f32 %v816_v41, %v737_v40 }
 0x4b3   : > { %v818_v44 = vpop.f32.mrf.mxu0 }
 0x4b4   : > { %v831_v45 = vadd.f32 %v827_v39, %v817_v42  ;;  %v819_v46 = vadd.f32 %v818_v44, %v737_v40 }
 0x4b5   : > { %v822_v49 = vpop.f32.mrf.mxu0 }
 0x4b6   : > { %v832_v50 = vadd.f32 %v828_v43, %v819_v46  ;;  %v823_v51 = vadd.f32 %v822_v49, %v742_v48  ;;  %v835_v54 = vmax.f32 %v831_v45, 0.0 }
 0x4b7   : > { %v824_v53 = vpop.f32.mrf.mxu0 }
 0x4b8   : > { %v836_v55 = vmax.f32 %v832_v50, 0.0  ;;  %v833_v56 = vadd.f32 %v829_v47, %v823_v51  ;;  %v825_v57 = vadd.f32 %v824_v53, %v742_v48 }
 0x4ba   : > { %v936_v58 = vpack.c.bf16 %v836_v55, %v835_v54  ;;  %v834_v59 = vadd.f32 %v830_v52, %v825_v57  ;;  %v837_v60 = vmax.f32 %v833_v56, 0.0 }
 0x4bc   : > { %851 = vst [vmem:[%s332_s21] sm:$0xff] %v936_v58  ;;  %v838_v61 = vmax.f32 %v834_v59, 0.0 }
 0x4be   : > { %v937_v62 = vpack.c.bf16 %v838_v61, %v837_v60 }
 0x4c0   : > { %852 = vst [vmem:[%s332_s21 + $0x8] sm:$0xff] %v937_v62 }
 0x4c1 PF: > { %s19_s30 = sadd.s32 1, %s974_s30  }
 0x4c2   : > { %p16_p4 = scmp.ge.s32.totalorder %s19_s30, 4  }
 0x4c4   :  { %18 = sbr.rel (!%p16_p4) target bundleno = 1 (0x1), region = 86 }

// kernel: dualgcn_forward.7
= control target key start
LH: loop header
LB: loop body
LE: loop exit
PB: predicated region body
PF: predicated region fallthrough
CT: control target
= control target key end

     0   :  { %s529_s12 = smov 0   ;;  %s582_s0 = inlined_call_operand.vmem [shape: bf16[2,144,256], index: 0, kind: input, shape index: {}]   ;;  %s583_s1 = inlined_call_operand.vmem [shape: bf16[16,144], index: 1, kind: input, shape index: {}]   ;;  %s584_s2 = inlined_call_operand.vmem [shape: f32[16,1], index: 2, kind: input, shape index: {}]   ;;  %s585_s3 = inlined_call_operand.vmem [shape: bf16[2,16,256], index: 3, kind: output, shape index: {}]  }
   0x1 LB: > { %s423_s13 = sadd.s32 4294967295, %s506_s12   ;;  %p427_p0 = scmp.ge.s32.totalorder %s506_s12, 1  ;;  %s506_s12 = sphi %s529_s12, %s13_s12  }
   0x2   : > { %p137_p1 = scmp.lt.s32.totalorder %s506_s12, 3 }
   0x4   : > { %p138_p2 = pnand %p427_p0, %p137_p1 }
   0x5   : > { %p161_p3 = scmp.lt.s32.totalorder (!%p138_p2), %s423_s13, 1 }
   0x6   : > { %141 = sbr.rel (%p138_p2) target bundleno = 258 (0x102), region = 32 }
   0xb   : > { %vm303_vm0 = vcmask 130048   ;;  %v499_v0 = vld [vmem:[%s583_s1 + $0x4] ss:$8 sps:$4 sm:$0xff]   ;;  %s587_s13 = smov (!%p161_p3, %s423_s13), 1  ;;  %v508_v2 = vmov 0  }
   0xc   : > { %v192_v1 = vld [vmem:[%s584_s2] sm:$0xff]  ;;  %469 = vset.pattern.permute.xlu0 %v508_v2  ;;  %451 = vmatprep.mubr.msk.bf16.mxu0 %vm303_vm0, %v499_v0  ;;  %s459_s18 = smul.u32 144, %s587_s13  ;;  %v193_v3 = vld [vmem:[%s584_s2 + $0x8] sm:$0xff]  ;;  %s456_s26 = sshll.u32 %s587_s13, 4 }
   0xd   : > { %196 = vperm.xlu0 %469, %v192_v1   ;;  %v497_v22 = vld [vmem:[%s583_s1] ss:$8 sps:$4 sm:$0xff]   ;;  %s170_s29 = scalar_lea.vmem %s585_s3, %s456_s26 }
   0xe   : > { %s552_s23 = scalar_lea.vmem %s582_s0, %s459_s18 }
   0xf   : > { %v470_v4 = vld [vmem:[%s552_s23 + $0x74] ss:$8 sps:$4 sm:$0xff]   ;;  %v472_v5 = vld [vmem:[%s552_s23 + $0x70] ss:$8 sps:$4 sm:$0xff]   ;;  %v473_v6 = vld [vmem:[%s552_s23 + $0x64] ss:$8 sps:$4 sm:$0xff]  }
  0x10   : > { %307 = vmatprep.subr.bf16.mxu0 %v470_v4  ;;  %v475_v7 = vld [vmem:[%s552_s23 + $0x60] ss:$8 sps:$4 sm:$0xff]   ;;  %v476_v8 = vld [vmem:[%s552_s23 + $0x54] ss:$8 sps:$4 sm:$0xff]   ;;  %v478_v9 = vld [vmem:[%s552_s23 + $0x50] ss:$8 sps:$4 sm:$0xff]  }
  0x11   : > { %201 = vperm.xlu0 %469, %v193_v3   ;;  %308 = vmatpush1.bf16.msra.mxu0 %v472_v5  ;;  %v479_v10 = vld [vmem:[%s552_s23 + $0x44] ss:$8 sps:$4 sm:$0xff]   ;;  %v481_v11 = vld [vmem:[%s552_s23 + $0x40] ss:$8 sps:$4 sm:$0xff]   ;;  %v482_v12 = vld [vmem:[%s552_s23 + $0x34] ss:$8 sps:$4 sm:$0xff]  }
  0x12   : > { %309 = vmatprep.subr.bf16.mxu0 %v473_v6  ;;  %v484_v13 = vld [vmem:[%s552_s23 + $0x30] ss:$8 sps:$4 sm:$0xff]   ;;  %v485_v14 = vld [vmem:[%s552_s23 + $0x24] ss:$8 sps:$4 sm:$0xff]   ;;  %v487_v15 = vld [vmem:[%s552_s23 + $0x20] ss:$8 sps:$4 sm:$0xff]  }
  0x13   : > { %v488_v16 = vld [vmem:[%s552_s23 + $0x14] ss:$8 sps:$4 sm:$0xff]   ;;  %v490_v17 = vld [vmem:[%s552_s23 + $0x10] ss:$8 sps:$4 sm:$0xff]   ;;  %v491_v18 = vld [vmem:[%s552_s23 + $0x4] ss:$8 sps:$4 sm:$0xff]  }
  0x14   : > { %v493_v19 = vld [vmem:[%s552_s23] ss:$8 sps:$4 sm:$0xff]   ;;  %v494_v20 = vld [vmem:[%s552_s23 + $0x84] ss:$8 sps:$4 sm:$0xff]  }
  0x15   : > { %310 = vmatpush1.bf16.msra.mxu0 %v475_v7  ;;  %v496_v21 = vld [vmem:[%s552_s23 + $0x80] ss:$8 sps:$4 sm:$0xff]  }
  0x16   : > { %311 = vmatprep.subr.bf16.mxu0 %v476_v8 }
  0x19   : > { %312 = vmatpush1.bf16.msra.mxu0 %v478_v9 }
  0x1a   : > { %313 = vmatprep.subr.bf16.mxu0 %v479_v10 }
  0x1d   : > { %314 = vmatpush1.bf16.msra.mxu0 %v481_v11 }
  0x1e   : > { %315 = vmatprep.subr.bf16.mxu0 %v482_v12 }
  0x21   : > { %316 = vmatpush1.bf16.msra.mxu0 %v484_v13 }
  0x22   : > { %317 = vmatprep.subr.bf16.mxu0 %v485_v14 }
  0x25   : > { %318 = vmatpush1.bf16.msra.mxu0 %v487_v15 }
  0x26   : > { %319 = vmatprep.subr.bf16.mxu0 %v488_v16 }
  0x29   : > { %320 = vmatpush1.bf16.msra.mxu0 %v490_v17 }
  0x2a   : > { %321 = vmatprep.subr.bf16.mxu0 %v491_v18 }
  0x2d   : > { %322 = vmatpush1.bf16.msra.mxu0 %v493_v19 }
  0x2e   : > { %337 = vmatprep.subr.bf16.mxu0 %v494_v20 }
  0x31   : > { %338 = vmatpush2.bf16.msra.mxu0 %v496_v21 }
  0x34   : > { %340 = vmatmul.mubr.bf16.vlgmr.msra.gmra.mxu0 %v497_v22 }
  0x88   : > { %v197_v23 = vpop.permute.xlu0 %196 }
  0x8c   : > { %v202_v28 = vpop.permute.xlu0 %201 }
  0xf4   : > { %v341_v24 = vpop.f32.mrf.mxu0 }
  0xf5   : > { %v342_v25 = vadd.f32 %v341_v24, %v197_v23 }
  0xf6   : > { %v343_v26 = vpop.f32.mrf.mxu0 }
  0xf7   : > { %v344_v27 = vadd.f32 %v343_v26, %v197_v23  ;;  %v350_v30 = vmax.f32 %v342_v25, 0.0 }
  0xf8   : > { %v345_v29 = vpop.f32.mrf.mxu0 }
  0xf9   : > { %v351_v31 = vmax.f32 %v344_v27, 0.0  ;;  %v346_v32 = vadd.f32 %v345_v29, %v202_v28 }
  0xfa   : > { %v347_v33 = vpop.f32.mrf.mxu0 }
  0xfb   : > { %v457_v34 = vpack.c.bf16 %v351_v31, %v350_v30  ;;  %v348_v35 = vadd.f32 %v347_v33, %v202_v28  ;;  %v352_v36 = vmax.f32 %v346_v32, 0.0 }
  0xfd   : > { %366 = vst [vmem:[%s170_s29] sm:$0xff] %v457_v34  ;;  %v353_v37 = vmax.f32 %v348_v35, 0.0 }
  0xff   : > { %v458_v38 = vpack.c.bf16 %v353_v37, %v352_v36 }
 0x101   : > { %367 = vst [vmem:[%s170_s29 + $0x8] sm:$0xff] %v458_v38 }
 0x102 PF: > { %s13_s12 = sadd.s32 1, %s506_s12  }
 0x103   : > { %p10_p4 = scmp.ge.s32.totalorder %s13_s12, 4  }
 0x105   :  { %12 = sbr.rel (!%p10_p4) target bundleno = 1 (0x1), region = 62 }

// kernel: dualgcn_forward.9
= control target key start
LH: loop header
LB: loop body
LE: loop exit
PB: predicated region body
PF: predicated region fallthrough
CT: control target
= control target key end

     0   :  { %s662_s18 = smov 0   ;;  %s723_s0 = inlined_call_operand.vmem [shape: bf16[2,144,256], index: 0, kind: input, shape index: {}]   ;;  %s724_s1 = inlined_call_operand.vmem [shape: bf16[16,144], index: 1, kind: input, shape index: {}]   ;;  %s725_s2 = inlined_call_operand.vmem [shape: f32[16,1], index: 2, kind: input, shape index: {}]   ;;  %s726_s3 = inlined_call_operand.vmem [shape: f32[8,16], index: 3, kind: input, shape index: {}]   ;;  %s727_s4 = inlined_call_operand.vmem [shape: f32[8,1], index: 4, kind: input, shape index: {}]   ;;  %s728_s5 = inlined_call_operand.vmem [shape: f32[2,8,256], index: 5, kind: output, shape index: {}]  }
   0x1 LB: > { %s546_s19 = sadd.s32 4294967295, %s628_s18   ;;  %p550_p0 = scmp.ge.s32.totalorder %s628_s18, 1  ;;  %s628_s18 = sphi %s662_s18, %s15_s18  }
   0x2   : > { %p187_p1 = scmp.lt.s32.totalorder %s628_s18, 3 }
   0x4   : > { %p188_p2 = pnand %p550_p0, %p187_p1 }
   0x5   : > { %p215_p3 = scmp.lt.s32.totalorder (!%p188_p2), %s546_s19, 1 }
   0x6   : > { %191 = sbr.rel (%p188_p2) target bundleno = 457 (0x1c9), region = 40 }
   0xb   : > { %vm357_vm0 = vcmask 130048   ;;  %v621_v0 = vld [vmem:[%s724_s1 + $0x4] ss:$8 sps:$4 sm:$0xff]   ;;  %s730_s19 = smov (!%p215_p3, %s546_s19), 1  ;;  %v630_v2 = vmov 0   ;;  %v631_v23 = vmov 0.0  }
   0xc   : > { %v247_v1 = vld [vmem:[%s725_s2 + $0x8] sm:$0xff]  ;;  %590 = vset.pattern.permute.xlu0 %v630_v2  ;;  %591 = vset.pattern.permute.xlu1 %v630_v2  ;;  %s579_s24 = smul.u32 144, %s730_s19  ;;  %v246_v3 = vld [vmem:[%s725_s2] sm:$0xff]  ;;  %s578_s11 = sshll.u32 %s730_s19, 4 }
   0xd   : > { %574 = vmatprep.mubr.msk.bf16.mxu0 %vm357_vm0, %v621_v0  ;;  %255 = vperm.xlu0 %590, %v247_v1   ;;  %v619_v22 = vld [vmem:[%s724_s1] ss:$8 sps:$4 sm:$0xff]   ;;  %s224_s14 = scalar_lea.vmem %s728_s5, %s578_s11 }
   0xe   : > { %s686_s29 = scalar_lea.vmem %s723_s0, %s579_s24  ;;  %482 = vmatprep.mubr.f32.mxu1 %v631_v23  ;;  %v409_v24 = vld [vmem:[%s727_s4] sm:$0xff] }
   0xf   : > { %v592_v4 = vld [vmem:[%s686_s29 + $0x74] ss:$8 sps:$4 sm:$0xff]   ;;  %v594_v5 = vld [vmem:[%s686_s29 + $0x70] ss:$8 sps:$4 sm:$0xff]   ;;  %v595_v6 = vld [vmem:[%s686_s29 + $0x64] ss:$8 sps:$4 sm:$0xff]   ;;  %412 = vperm.xlu1 %591, %v409_v24  }
  0x10   : > { %361 = vmatprep.subr.bf16.mxu0 %v592_v4  ;;  %v597_v7 = vld [vmem:[%s686_s29 + $0x60] ss:$8 sps:$4 sm:$0xff]   ;;  %v598_v8 = vld [vmem:[%s686_s29 + $0x54] ss:$8 sps:$4 sm:$0xff]   ;;  %v600_v9 = vld [vmem:[%s686_s29 + $0x50] ss:$8 sps:$4 sm:$0xff]  }
  0x11   : > { %250 = vperm.xlu0 %590, %v246_v3   ;;  %362 = vmatpush1.bf16.msra.mxu0 %v594_v5  ;;  %v601_v10 = vld [vmem:[%s686_s29 + $0x44] ss:$8 sps:$4 sm:$0xff]   ;;  %v603_v11 = vld [vmem:[%s686_s29 + $0x40] ss:$8 sps:$4 sm:$0xff]   ;;  %v604_v12 = vld [vmem:[%s686_s29 + $0x34] ss:$8 sps:$4 sm:$0xff]  }
  0x12   : > { %363 = vmatprep.subr.bf16.mxu0 %v595_v6  ;;  %v606_v13 = vld [vmem:[%s686_s29 + $0x30] ss:$8 sps:$4 sm:$0xff]   ;;  %v607_v14 = vld [vmem:[%s686_s29 + $0x24] ss:$8 sps:$4 sm:$0xff]   ;;  %v609_v15 = vld [vmem:[%s686_s29 + $0x20] ss:$8 sps:$4 sm:$0xff]  }
  0x13   : > { %v610_v16 = vld [vmem:[%s686_s29 + $0x14] ss:$8 sps:$4 sm:$0xff]   ;;  %v612_v17 = vld [vmem:[%s686_s29 + $0x10] ss:$8 sps:$4 sm:$0xff]   ;;  %v613_v18 = vld [vmem:[%s686_s29 + $0x4] ss:$8 sps:$4 sm:$0xff]  }
  0x14   : > { %v615_v19 = vld [vmem:[%s686_s29] ss:$8 sps:$4 sm:$0xff]   ;;  %v616_v20 = vld [vmem:[%s686_s29 + $0x84] ss:$8 sps:$4 sm:$0xff]  }
  0x15   : > { %364 = vmatpush1.bf16.msra.mxu0 %v597_v7  ;;  %v618_v21 = vld [vmem:[%s686_s29 + $0x80] ss:$8 sps:$4 sm:$0xff]  }
  0x16   : > { %365 = vmatprep.subr.bf16.mxu0 %v598_v8  ;;  %v408_v39 = vld [vmem:[%s726_s3] sm:$0xff] }
  0x19   : > { %366 = vmatpush1.bf16.msra.mxu0 %v600_v9 }
  0x1a   : > { %367 = vmatprep.subr.bf16.mxu0 %v601_v10 }
  0x1d   : > { %368 = vmatpush1.bf16.msra.mxu0 %v603_v11 }
  0x1e   : > { %369 = vmatprep.subr.bf16.mxu0 %v604_v12 }
  0x21   : > { %370 = vmatpush1.bf16.msra.mxu0 %v606_v13 }
  0x22   : > { %371 = vmatprep.subr.bf16.mxu0 %v607_v14 }
  0x25   : > { %372 = vmatpush1.bf16.msra.mxu0 %v609_v15 }
  0x26   : > { %373 = vmatprep.subr.bf16.mxu0 %v610_v16 }
  0x29   : > { %374 = vmatpush1.bf16.msra.mxu0 %v612_v17 }
  0x2a   : > { %375 = vmatprep.subr.bf16.mxu0 %v613_v18 }
  0x2d   : > { %376 = vmatpush1.bf16.msra.mxu0 %v615_v19 }
  0x2e   : > { %391 = vmatprep.subr.bf16.mxu0 %v616_v20 }
  0x31   : > { %392 = vmatpush2.bf16.msra.mxu0 %v618_v21 }
  0x34   : > { %394 = vmatmul.mubr.bf16.vlgmr.msra.gmra.mxu0 %v619_v22 }
  0x88   : > { %v256_v25 = vpop.permute.xlu0 %255 }
  0x8a   : > { %v413_v40 = vpop.permute.xlu1 %412 }
  0x8c   : > { %v251_v29 = vpop.permute.xlu0 %250 }
  0xf4   : > { %v395_v26 = vpop.f32.mrf.mxu0 }
  0xf5   : > { %v396_v34 = vadd.f32 %v395_v26, %v251_v29 }
  0xf6   : > { %v397_v27 = vpop.f32.mrf.mxu0 }
  0xf7   : > { %v398_v32 = vadd.f32 %v397_v27, %v251_v29  ;;  %v404_v38 = vmax.f32 %v396_v34, 0.0 }
  0xf8   : > { %v399_v28 = vpop.f32.mrf.mxu0 }
  0xf9   : > { %v400_v30 = vadd.f32 %v399_v28, %v256_v25  ;;  %v405_v37 = vmax.f32 %v398_v32, 0.0 }
  0xfa   : > { %v401_v31 = vpop.f32.mrf.mxu0 }
  0xfb   : > { %v402_v33 = vadd.f32 %v401_v31, %v256_v25  ;;  %v406_v36 = vmax.f32 %v400_v30, 0.0 }
  0xfd   : > { %v407_v35 = vmax.f32 %v402_v33, 0.0 }
  0xff   : > { %446 = vmatprep.subr.mxu1 %v407_v35 }
 0x100   : > { %447 = vmatpush1.msra.mxu1 %v406_v36 }
 0x101   : > { %448 = vmatprep.subr.mxu1 %v405_v37 }
 0x102   : > { %449 = vmatpush1.msra.mxu1 %v404_v38 }
 0x103   : > { %575 = vmatmul.mubr.msk.f32.vlgmr.msra.gmra.mxu1 %vm357_vm0, %v408_v39 }
 0x1c3   : > { %v484_v41 = vpop.f32.mrf.mxu1 }
 0x1c4   : > { %v485_v42 = vadd.f32 %v484_v41, %v413_v40 }
 0x1c5   : > { %v486_v43 = vpop.f32.mrf.mxu1 }
 0x1c6   : > { %489 = vst [vmem:[%s224_s14] sm:$0xff] %v485_v42  ;;  %v487_v44 = vadd.f32 %v486_v43, %v413_v40 }
 0x1c8   : > { %490 = vst [vmem:[%s224_s14 + $0x8] sm:$0xff] %v487_v44 }
 0x1c9 PF: > { %s15_s18 = sadd.s32 1, %s628_s18  }
 0x1ca   : > { %p12_p4 = scmp.ge.s32.totalorder %s15_s18, 4  }
 0x1cc   :  { %14 = sbr.rel (!%p12_p4) target bundleno = 1 (0x1), region = 70 }

// kernel: dualgcn_forward.8
= control target key start
LH: loop header
LB: loop body
LE: loop exit
PB: predicated region body
PF: predicated region fallthrough
CT: control target
= control target key end

     0   :  { %s1183_s30 = smov 0   ;;  %s1284_s0 = inlined_call_operand.vmem [shape: f32[2,16,4], index: 0, kind: input, shape index: {}]   ;;  %s1285_s1 = inlined_call_operand.vmem [shape: bf16[2,16,256], index: 1, kind: input, shape index: {}]   ;;  %s1286_s2 = inlined_call_operand.vmem [shape: f32[24,16], index: 2, kind: input, shape index: {}]   ;;  %s1287_s3 = inlined_call_operand.vmem [shape: f32[24,1], index: 3, kind: input, shape index: {}]   ;;  %s1288_s4 = inlined_call_operand.vmem [shape: f32[8,8], index: 4, kind: input, shape index: {}]   ;;  %s1289_s5 = inlined_call_operand.vmem [shape: f32[8,1], index: 5, kind: input, shape index: {}]   ;;  %s1290_s6 = inlined_call_operand.vmem [shape: f32[16,8], index: 6, kind: input, shape index: {}]   ;;  %s1291_s7 = inlined_call_operand.vmem [shape: f32[16,1], index: 7, kind: input, shape index: {}]   ;;  %s1292_s8 = inlined_call_operand.vmem [shape: f32[4,256], index: 8, kind: input, shape index: {}]   ;;  %s1293_s9 = inlined_call_operand.vmem [shape: bf16[2,16,256], index: 9, kind: output, shape index: {}]  }
   0x1 LB: > { %s1025_s10 = sadd.s32 4294967295, %s1128_s30   ;;  %p1029_p0 = scmp.ge.s32.totalorder %s1128_s30, 1  ;;  %s1128_s30 = sphi %s1183_s30, %s19_s30  }
   0x2   : > { %p297_p1 = scmp.lt.s32.totalorder %s1128_s30, 3 }
   0x4   : > { %p298_p2 = pnand %p1029_p0, %p297_p1 }
   0x5   : > { %p338_p3 = scmp.lt.s32.totalorder (!%p298_p2), %s1025_s10, 1 }
   0x6   : > { %301 = sbr.rel (%p298_p2) target bundleno = 1652 (0x674), region = 56 }
   0xb   : > { %v1130_v0 = vmov 0.0   ;;  %vm1131_vm0 = vmmov 0   ;;  %v360_v1 = vld [vmem:[%s1287_s3 + $0x10] sm:$0xff]  ;;  %s1295_s10 = smov (!%p338_p3, %s1025_s10), 1  ;;  %v1132_v2 = vmov 0   ;;  %v359_v3 = vld [vmem:[%s1287_s3 + $0x8] sm:$0xff] }
   0xc   : > { %1072 = vmatprep.subr.mxu0 %v1130_v0  ;;  %1076 = vmatprep.mubr.msk.f32.mxu0 %vm1131_vm0, %v1130_v0  ;;  %s1200_s13 = sshll.u32 %s1295_s10, 4  ;;  %v355_v6 = vld [vmem:[%s1286_s2] sm:$0xff]  ;;  %vm376_vm1 = vcmask 130048   ;;  %v356_v8 = vld [vmem:[%s1286_s2 + $0x8] sm:$0xff]  ;;  %v357_v10 = vld [vmem:[%s1286_s2 + $0x10] sm:$0xff]  ;;  %vm466_vm2 = vcmask 31744  }
   0xd   : > { %1116 = vset.pattern.permute.xlu0 %v1132_v2  ;;  %1085 = vmatprep.subr.mxu1 %v1130_v0  ;;  %s342_s18 = scalar_lea.vmem %s1284_s0, %s1200_s13  ;;  %v358_v7 = vld [vmem:[%s1287_s3] sm:$0xff]  ;;  %v743_v12 = vld [vmem:[%s1291_s7 + $0x8] sm:$0xff]  ;;  %vm543_vm3 = vcmask 64512   ;;  %vm848_vm4 = vcmask 1043456   ;;  %s347_s24 = scalar_lea.vmem %s1285_s1, %s1200_s13 }
   0xe   : > { %373 = vperm.xlu0 %1116, %v360_v1   ;;  %1087 = vmatprep.mubr.msk.f32.mxu1 %vm1131_vm0, %v1130_v0  ;;  %v1209_v4 = vld [vmem:[%s342_s18 + $0x8] sm:$0xff]  ;;  %v1211_v5 = vld [vmem:[%s342_s18] sm:$0xff]  ;;  %s352_s27 = scalar_lea.vmem %s1293_s9, %s1200_s13 }
   0xf   : > { %1073 = vmatpush3.msra.mxu0 %v1209_v4  ;;  %v661_v9 = vld [vmem:[%s1289_s5] sm:$0xff]  ;;  %v741_v45 = vld [vmem:[%s1290_s6 + $0x8] sm:$0xff] }
  0x10   : > { %1074 = vmatprep.subr.mxu0 %v1130_v0  ;;  %v742_v11 = vld [vmem:[%s1291_s7] sm:$0xff]  ;;  %v931_v60 = vld [vmem:[%s347_s24 + $0x8] sm:$0xff] }
  0x11   : > { %1075 = vmatpush3.msra.mxu0 %v1211_v5  ;;  %v660_v37 = vld [vmem:[%s1288_s4] sm:$0xff]  ;;  %v934_v1 = vunpack.c.l.bf16 %v931_v60 }
  0x12   : > { %368 = vperm.xlu0 %1116, %v359_v3   ;;  %1077 = vmatmul.mubr.msk.f32.vlgmr.msra.gmra.mxu0 %vm376_vm1, %v355_v6  ;;  %v740_v40 = vld [vmem:[%s1290_s6] sm:$0xff] }
  0x13   : > { %1079 = vmatprep.mubr.msk.f32.mxu0 %vm1131_vm0, %v1130_v0  ;;  %v839_v46 = vld [vmem:[%s1292_s8] sm:$0xff] }
  0x14   : > { %v841_v47 = vcombine.high %v839_v46, %v839_v46  ;;  %v930_v58 = vld [vmem:[%s347_s24] sm:$0xff] }
  0x15   : > { %v932_v59 = vunpack.c.l.bf16 %v930_v58  ;;  %v933_v61 = vunpack.c.h.bf16 %v930_v58 }
  0x16   : > { %363 = vperm.xlu0 %1116, %v358_v7   ;;  %1080 = vmatmul.mubr.msk.f32.gmra.mxu0 %vm376_vm1, %v356_v8 }
  0x17   : > { %1082 = vmatprep.mubr.msk.f32.mxu0 %vm1131_vm0, %v1130_v0 }
  0x1a   : > { %664 = vperm.xlu0 %1116, %v661_v9   ;;  %1083 = vmatmul.mubr.msk.f32.gmra.mxu0 %vm376_vm1, %v357_v10 }
  0x1b   : > { %1102 = vmatprep.mubr.msk.f32.mxu0 %vm543_vm3, %v740_v40 }
  0x1e   : > { %746 = vperm.xlu0 %1116, %v742_v11  }
  0x22   : > { %751 = vperm.xlu0 %1116, %v743_v12  }
  0x89   : > { %v374_v13 = vpop.permute.xlu0 %373 }
  0x8d   : > { %v369_v17 = vpop.permute.xlu0 %368 }
  0x91   : > { %v364_v22 = vpop.permute.xlu0 %363 }
  0x95   : > { %v665_v41 = vpop.permute.xlu0 %664 }
  0x99   : > { %v747_v48 = vpop.permute.xlu0 %746 }
  0x9d   : > { %v752_v50 = vpop.permute.xlu0 %751 }
  0xd2   : > { %v452_v14 = vpop.f32.mrf.mxu0 }
  0xd3   : > { %v453_v24 = vadd.f32 %v452_v14, %v364_v22 }
  0xd4   : > { %v1078_v15 = vpop.f32.mrf.mxu0 }
  0xd6   : > { %v457_v16 = vpop.f32.mrf.mxu0 }
  0xd7   : > { %v458_v23 = vadd.f32 %v457_v16, %v369_v17 }
  0xd8   : > { %v1081_v18 = vpop.f32.mrf.mxu0 }
  0xda   : > { %v462_v19 = vpop.f32.mrf.mxu0 }
  0xdb   : > { %v463_v20 = vadd.f32 %v462_v19, %v374_v13 }
  0xdc   : > { %v1084_v21 = vpop.f32.mrf.mxu0 }
  0xdd   : > { %1086 = vmatpush3.xpose.msk.msra.mxu1 %vm466_vm2, %v463_v20 }
  0xde   : > { %1090 = vmatprep.subr.mxu1 %v1130_v0 }
  0xe0   : > { %1088 = vmatmul.mubr.msk.f32.vlgmr.msra.gmra.mxu1 %vm466_vm2, %v458_v23 }
  0xe1   : > { %1091 = vmatpush3.msra.mxu1 %v453_v24  ;;  %1092 = vmatprep.mubr.msk.f32.mxu1 %vm1131_vm0, %v1130_v0 }
  0xe2   : > { %1095 = vmatprep.subr.mxu1 %v1130_v0 }
 0x1a0   : > { %v539_v25 = vpop.f32.mrf.mxu1 }
 0x1a1   : > { %v544_v26 = vsel %vm543_vm3, %v539_v25, -inf }
 0x1a2   : > { %545 = vmax.xlane.f32.xlu1 %v544_v26  ;;  %v1089_v27 = vpop.f32.mrf.mxu1 }
 0x22b   : > { %v546_v28 = vpop.xlane.xlu1 %545 }
 0x22c   : > { %v547_v29 = vsub.f32 %v539_v25, %v546_v28 }
 0x22e   : > { %v548_v30 = vmul.f32 1.442695, %v547_v29 }
 0x230   : > { %1118 = vpow2.f32 %v548_v30 }
 0x23d   : > { %v1119_v31 = vpop.eup %1118 }
 0x23e   : > { %v550_v32 = vsel %vm543_vm3, %v1119_v31, 0.0 }
 0x23f   : > { %551 = vadd.xlane.f32.xlu1 %v550_v32 }
 0x2c8   : > { %v552_v33 = vpop.xlane.xlu1 %551 }
 0x2c9   : > { %1120 = vrcp.f32 %v552_v33 }
 0x2d6   : > { %v1121_v34 = vpop.eup %1120 }
 0x2d7   : > { %v554_v35 = vmul.f32 %v1121_v34, %v1119_v31 }
 0x2d9   : > { %555 = vxpose.xlu1.b32.start.end [1/1] (short) (narrow) %v554_v35, 8 }
 0x355   : > { %v571_v36 = vpop.trf.xlu1 }
 0x356   : > { %1093 = vmatmul.mubr.msk.f32.vlgmr.msra.gmra.mxu1 %vm543_vm3, %v571_v36 }
 0x357   : > { %1097 = vmatprep.mubr.msk.f32.mxu1 %vm1131_vm0, %v1130_v0 }
 0x416   : > { %v656_v38 = vpop.f32.mrf.mxu1 }
 0x417   : > { %1096 = vmatpush3.msra.mxu1 %v656_v38 }
 0x418   : > { %v1094_v39 = vpop.f32.mrf.mxu1  ;;  %1098 = vmatmul.mubr.msk.f32.vlgmr.msra.gmra.mxu1 %vm543_vm3, %v660_v37  ;;  %1045 = vmatprep.subr.msk.mxu1 %vm848_vm4, %v841_v47 }
 0x419   : > { %917 = vmatprep.mubr.f32.mxu1 %v1130_v0  ;;  %1046 = vmatpush1.msk.msra.mxu1 %vm848_vm4, %v839_v46 }
 0x4d8   : > { %v736_v42 = vpop.f32.mrf.mxu1 }
 0x4d9   : > { %v737_v43 = vadd.f32 %v736_v42, %v665_v41 }
 0x4da   : > { %v1099_v44 = vpop.f32.mrf.mxu1 }
 0x4db   : > { %1100 = vmatprep.subr.mxu0 %v737_v43 }
 0x4dc   : > { %1101 = vmatpush3.msra.mxu0 %v737_v43 }
 0x4dd   : > { %1103 = vmatmul.mubr.msk.f32.vlgmr.msra.gmra.mxu0 %vm543_vm3, %v741_v45 }
 0x59d   : > { %v1104_v49 = vpop.f32.mrf.mxu0 }
 0x59e   : > { %v832_v52 = vadd.f32 %v1104_v49, %v752_v50 }
 0x59f   : > { %v826_v51 = vpop.f32.mrf.mxu0 }
 0x5a0   : > { %v827_v53 = vadd.f32 %v826_v51, %v747_v48  ;;  %v836_v55 = vadd.f32 %v832_v52, %v1209_v4  ;;  %v935_v4 = vunpack.c.h.bf16 %v931_v60 }
 0x5a2   : > { %v835_v54 = vadd.f32 %v827_v53, %v1211_v5  ;;  %v838_v57 = vmax.f32 %v836_v55, 0.0 }
 0x5a4   : > { %v837_v56 = vmax.f32 %v835_v54, 0.0 }
 0x5a6   : > { %1047 = vmatmul.mubr.msk.f32.vlgmr.msra.gmra.mxu1 %vm466_vm2, %v837_v56 }
 0x5a7   : > { %923 = vmatprep.mubr.f32.mxu1 %v1130_v0 }
 0x5aa   : > { %1048 = vmatmul.mubr.msk.f32.gmra.mxu1 %vm466_vm2, %v838_v57 }
 0x666   : > { %v919_v62 = vpop.f32.mrf.mxu1 }
 0x667   : > { %v936_v63 = vmul.f32 %v932_v59, %v919_v62 }
 0x668   : > { %v921_v2 = vpop.f32.mrf.mxu1 }
 0x669   : > { %v937_v3 = vmul.f32 %v933_v61, %v921_v2  ;;  %v940_v0 = vadd.f32 %v936_v63, %v932_v59 }
 0x66a   : > { %v925_v5 = vpop.f32.mrf.mxu1 }
 0x66b   : > { %v941_v6 = vadd.f32 %v937_v3, %v933_v61  ;;  %v938_v7 = vmul.f32 %v934_v1, %v925_v5 }
 0x66c   : > { %v927_v8 = vpop.f32.mrf.mxu1 }
 0x66d   : > { %v1056_v9 = vpack.c.bf16 %v941_v6, %v940_v0  ;;  %v939_v10 = vmul.f32 %v935_v4, %v927_v8  ;;  %v942_v11 = vadd.f32 %v938_v7, %v934_v1 }
 0x66f   : > { %956 = vst [vmem:[%s352_s27] sm:$0xff] %v1056_v9  ;;  %v943_v12 = vadd.f32 %v939_v10, %v935_v4 }
 0x671   : > { %v1057_v13 = vpack.c.bf16 %v943_v12, %v942_v11 }
 0x673   : > { %957 = vst [vmem:[%s352_s27 + $0x8] sm:$0xff] %v1057_v13 }
 0x674 PF: > { %s19_s30 = sadd.s32 1, %s1128_s30  }
 0x675   : > { %p16_p4 = scmp.ge.s32.totalorder %s19_s30, 4  }
 0x677   :  { %18 = sbr.rel (!%p16_p4) target bundleno = 1 (0x1), region = 89 }

</bundles_post_ra>
